<compile_context>
chip_gen: v7x
topology: tpu7x:2x2x1
jax: 0.10.0
libtpu: 0.0.40
codegen_flags: <defaults>
</compile_context>

<pallas_src>
import math
import functools

import jax
import jax.numpy as jnp
from jax import lax
from jax.experimental import pallas as pl
from jax.experimental.pallas import tpu as pltpu


def _favor_kernel(feat_ref, k_ref, v_ref, q_ref, o_ref, *, block_heads):
    """One grid step = `block_heads` batch-heads in native (feature, location) layout.

    feat_ref: (m, d)        bf16, phi_scale pre-folded
    k_ref:    (Bt, d,  Lk)  f32
    v_ref:    (Bt, dv, Lk)  f32
    q_ref:    (Bt, d,  Lq)  f32
    o_ref:    (Bt, dv, Lq)
    """
    feat = feat_ref[...]                                                 # (m, d) bf16

    for b in range(block_heads):                                         # Bt is small & static
        k = k_ref[b].astype(jnp.bfloat16)                                # (d, Lk)
        q = q_ref[b].astype(jnp.bfloat16)                                # (d, Lq)
        v = v_ref[b]                                                     # (dv, Lk) f32

        # phi(x) = relu(W_scaled @ x), computed transposed: (m, L).
        proj_k = jnp.dot(feat, k, preferred_element_type=jnp.float32)    # (m, Lk)
        proj_q = jnp.dot(feat, q, preferred_element_type=jnp.float32)    # (m, Lq)
        phi_k = jnp.maximum(proj_k, 0.0).astype(jnp.bfloat16)            # (m, Lk)
        phi_q = jnp.maximum(proj_q, 0.0).astype(jnp.bfloat16)            # (m, Lq)

        # Fuse ksum into the kv matmul: append a row of ones to v so that the
        # last row of kv_aug equals sum_l phi_k[:, l].
        ones_row = jnp.ones((1, v.shape[-1]), dtype=v.dtype)
        v_aug = jnp.concatenate([v, ones_row], axis=0).astype(jnp.bfloat16)  # (dv+1, Lk)

        # kv_aug[i, f] = sum_l v_aug[i, l] * phi_k[f, l]                 -> (dv+1, m)
        kv_aug = lax.dot_general(v_aug, phi_k, (((1,), (1,)), ((), ())),
                                 preferred_element_type=jnp.float32)
        kv_aug = kv_aug.astype(jnp.bfloat16)

        # out_aug[i, l'] = sum_f kv_aug[i, f] * phi_q[f, l']             -> (dv+1, Lq)
        out_aug = jnp.dot(kv_aug, phi_q, preferred_element_type=jnp.float32)

        dv = v.shape[0]
        out_t = out_aug[:dv, :]                                          # (dv, Lq) = out^T
        norm = out_aug[dv:dv + 1, :]                                     # (1, Lq)
        inv_norm = pl.reciprocal(norm, approx=True)                      # EUP slot, ~free
        o_ref[b] = (out_t * inv_norm).astype(o_ref.dtype)


def _pick_block_heads(B, d, dv, m, Lk, Lq, budget_bytes=20 * 1024 * 1024):
    """Largest divisor of B (<= 8) whose per-step VMEM footprint fits the budget."""
    blocks = 2 * 4 * ((d + dv) * Lk + (d + dv) * Lq)   # double-buffered f32 i/o blocks
    temps = 8 * m * (Lk + Lq)                          # proj/phi temporaries per head
    per_head = blocks + temps
    cap = max(1, min(B, 8))
    for bt in range(cap, 0, -1):
        if B % bt == 0 and bt * per_head <= budget_bytes:
            return bt
    return 1


def favor_forward(keys, values, queries, features):
    """keys/values: (batch, heads, d/dv, *k_locs); queries: (batch, heads, d, *q_locs).

    Non-causal, multihead FAVOR with h(x)=1, f=[relu] (module defaults).
    """
    batch, heads, d = keys.shape[0], keys.shape[1], keys.shape[2]
    dv = values.shape[2]
    k_locs = keys.shape[3:]
    q_locs = queries.shape[3:]
    Lk = math.prod(k_locs)
    Lq = math.prod(q_locs)
    B = batch * heads
    m = features.shape[0]
    phi_scale = 1.0 / math.sqrt(m)

    # Native layout: flatten heads & locations only — no HBM transpose passes.
    k = keys.reshape(B, d, Lk)
    v = values.reshape(B, dv, Lk)
    q = queries.reshape(B, d, Lq)

    # Fold phi_scale into the tiny shared feature matrix, cast once to bf16.
    # (scale > 0 commutes through relu; it also cancels in out/norm.)
    feat = (features * phi_scale).astype(jnp.bfloat16)                   # (m, d)

    Bt = _pick_block_heads(B, d, dv, m, Lk, Lq)
    kernel = functools.partial(_favor_kernel, block_heads=Bt)

    out = pl.pallas_call(
        kernel,
        out_shape=jax.ShapeDtypeStruct((B, dv, Lq), queries.dtype),
        grid=(B // Bt,),
        in_specs=[
            pl.BlockSpec((m, d), lambda g: (0, 0)),                      # features (shared)
            pl.BlockSpec((Bt, d, Lk), lambda g: (g, 0, 0)),              # keys
            pl.BlockSpec((Bt, dv, Lk), lambda g: (g, 0, 0)),             # values
            pl.BlockSpec((Bt, d, Lq), lambda g: (g, 0, 0)),              # queries
        ],
        out_specs=pl.BlockSpec((Bt, dv, Lq), lambda g: (g, 0, 0)),
        compiler_params=pltpu.CompilerParams(
            dimension_semantics=("parallel",),
            vmem_limit_bytes=64 * 1024 * 1024,
        ),
    )(feat, k, v, q)

    # (B, dv, Lq) -> (batch, heads, dv, *q_locs): pure-metadata reshape, no transpose.
    return out.reshape(batch, heads, dv, *q_locs)


def favor_reference(keys, values, queries, features):
    """Pure-JAX f32 reference mirroring the PyTorch forward (non-causal, multihead)."""
    batch, heads, d = keys.shape[0], keys.shape[1], keys.shape[2]
    dv = values.shape[2]
    k_locs = keys.shape[3:]
    q_locs = queries.shape[3:]
    Lk = math.prod(k_locs)
    Lq = math.prod(q_locs)
    B = batch * heads
    m = features.shape[0]
    phi_scale = 1.0 / math.sqrt(m)

    k = keys.reshape(B, d, Lk).transpose(0, 2, 1)
    v = values.reshape(B, dv, Lk).transpose(0, 2, 1)
    q = queries.reshape(B, d, Lq).transpose(0, 2, 1)

    def phi(x):
        proj = jnp.matmul(x, features.T)
        return jax.nn.relu(proj) * 1.0 * phi_scale

    phi_k = phi(k)
    phi_q = phi(q)
    out = jnp.matmul(phi_q, jnp.matmul(phi_k.transpose(0, 2, 1), v))
    norm = jnp.matmul(phi_q, phi_k.sum(axis=1)[..., None])
    out = out / norm
    out = out.transpose(0, 2, 1).reshape(batch, heads, dv, *q_locs)
    return out


if __name__ == "__main__":
    # Small synthetic config consistent with the module.
    batch, heads = 2, 2
    key_dim, value_dim = 16, 16
    m = 128
    k_locs = (4, 4)   # keys_locations
    q_locs = (4, 4)   # queries_locations

    key = jax.random.PRNGKey(0)
    k_keys, k_vals, k_qry, k_feat = jax.random.split(key, 4)

    keys = jax.random.normal(k_keys, (batch, heads, key_dim) + k_locs, jnp.float32)
    values = jax.random.normal(k_vals, (batch, heads, value_dim) + k_locs, jnp.float32)
    queries = jax.random.normal(k_qry, (batch, heads, key_dim) + q_locs, jnp.float32)

    # Deterministic parameter init: random features drawn with randn then
    # orthonormalized with QR (matches orthonormal=True in __init__/features()).
    raw = jax.random.normal(k_feat, (m, key_dim), jnp.float32)
    features, _ = jnp.linalg.qr(raw)          # (m, key_dim)

    out = favor_forward(keys, values, queries, features)
    out = jax.block_until_ready(out)

    ref = favor_reference(keys, values, queries, features)
    assert out.shape == (batch, heads, value_dim) + q_locs
    # bf16 MXU operands + approx reciprocal -> relaxed tolerance vs the f32 reference.
    assert jnp.allclose(out, ref, atol=3e-2, rtol=3e-2)

    print("KERNEL_OK")
</pallas_src>

<mosaic_0001>
module attributes {stable_mosaic.version = 11 : i64} {
  func.func @_favor_kernel(%arg0: i32, %arg1: memref<128x16xbf16, #tpu.memory_space<vmem>>, %arg2: memref<4x16x16xf32, #tpu.memory_space<vmem>>, %arg3: memref<4x16x16xf32, #tpu.memory_space<vmem>>, %arg4: memref<4x16x16xf32, #tpu.memory_space<vmem>>, %arg5: memref<4x16x16xf32, #tpu.memory_space<vmem>>) attributes {dimension_semantics = [#tpu.dimension_semantics<parallel>], iteration_bounds = array<i64: 1>, scalar_prefetch = 0 : i64, scratch_operands = 0 : i64, tpu.core_type = #tpu.core_type<tc>, window_params = [{pipeline_mode = #tpu.pipeline_mode<synchronous>, transform_indices = @transform_0, window_bounds = array<i64: 128, 16>}, {transform_indices = @transform_1, window_bounds = array<i64: 4, 16, 16>}, {transform_indices = @transform_2, window_bounds = array<i64: 4, 16, 16>}, {transform_indices = @transform_3, window_bounds = array<i64: 4, 16, 16>}, {transform_indices = @transform_4, window_bounds = array<i64: 4, 16, 16>}]} {
    %c0 = arith.constant 0 : index
    %c0_0 = arith.constant 0 : index
    %0 = vector.load %arg1[%c0, %c0_0] : memref<128x16xbf16, #tpu.memory_space<vmem>>, vector<128x16xbf16>
    %c0_1 = arith.constant 0 : index
    %c0_2 = arith.constant 0 : index
    %c0_3 = arith.constant 0 : index
    %1 = vector.load %arg2[%c0_1, %c0_2, %c0_3] : memref<4x16x16xf32, #tpu.memory_space<vmem>>, vector<1x16x16xf32>
    %2 = vector.shape_cast %1 : vector<1x16x16xf32> to vector<16x16xf32>
    %3 = arith.truncf %2 : vector<16x16xf32> to vector<16x16xbf16>
    %c0_4 = arith.constant 0 : index
    %c0_5 = arith.constant 0 : index
    %c0_6 = arith.constant 0 : index
    %4 = vector.load %arg4[%c0_4, %c0_5, %c0_6] : memref<4x16x16xf32, #tpu.memory_space<vmem>>, vector<1x16x16xf32>
    %5 = vector.shape_cast %4 : vector<1x16x16xf32> to vector<16x16xf32>
    %6 = arith.truncf %5 : vector<16x16xf32> to vector<16x16xbf16>
    %c0_7 = arith.constant 0 : index
    %c0_8 = arith.constant 0 : index
    %c0_9 = arith.constant 0 : index
    %7 = vector.load %arg3[%c0_7, %c0_8, %c0_9] : memref<4x16x16xf32, #tpu.memory_space<vmem>>, vector<1x16x16xf32>
    %8 = vector.shape_cast %7 : vector<1x16x16xf32> to vector<16x16xf32>
    %cst = arith.constant dense<0.000000e+00> : vector<128x16xf32>
    %9 = tpu.matmul %0, %3, %cst {dimension_numbers = #tpu.dot_dimension_numbers<[1], [0], [0], [1], [0, 0, 1, 1], [], []>} : vector<128x16xbf16>, vector<16x16xbf16>, vector<128x16xf32> -> vector<128x16xf32>
    %cst_10 = arith.constant dense<0.000000e+00> : vector<128x16xf32>
    %10 = tpu.matmul %0, %6, %cst_10 {dimension_numbers = #tpu.dot_dimension_numbers<[1], [0], [0], [1], [0, 0, 1, 1], [], []>} : vector<128x16xbf16>, vector<16x16xbf16>, vector<128x16xf32> -> vector<128x16xf32>
    %cst_11 = arith.constant 0.000000e+00 : f32
    %11 = vector.broadcast %cst_11 : f32 to vector<128x16xf32>
    %12 = arith.maximumf %9, %11 : vector<128x16xf32>
    %13 = arith.truncf %12 : vector<128x16xf32> to vector<128x16xbf16>
    %cst_12 = arith.constant 0.000000e+00 : f32
    %14 = vector.broadcast %cst_12 : f32 to vector<128x16xf32>
    %15 = arith.maximumf %10, %14 : vector<128x16xf32>
    %16 = arith.truncf %15 : vector<128x16xf32> to vector<128x16xbf16>
    %cst_13 = arith.constant 1.000000e+00 : f32
    %17 = vector.broadcast %cst_13 : f32 to vector<1x16xf32>
    %18 = tpu.concatenate %8, %17 in 0 : vector<16x16xf32>, vector<1x16xf32> -> vector<17x16xf32>
    %19 = arith.truncf %18 : vector<17x16xf32> to vector<17x16xbf16>
    %cst_14 = arith.constant dense<0.000000e+00> : vector<17x128xf32>
    %20 = tpu.matmul %19, %13, %cst_14 {dimension_numbers = #tpu.dot_dimension_numbers<[1], [1], [0], [0], [0, 0, 1, 0], [], []>} : vector<17x16xbf16>, vector<128x16xbf16>, vector<17x128xf32> -> vector<17x128xf32>
    %21 = arith.truncf %20 : vector<17x128xf32> to vector<17x128xbf16>
    %cst_15 = arith.constant dense<0.000000e+00> : vector<17x16xf32>
    %22 = tpu.matmul %21, %16, %cst_15 {dimension_numbers = #tpu.dot_dimension_numbers<[1], [0], [0], [1], [0, 0, 1, 1], [], []>} : vector<17x128xbf16>, vector<128x16xbf16>, vector<17x16xf32> -> vector<17x16xf32>
    %23 = vector.extract_strided_slice %22 {offsets = [0, 0], sizes = [16, 16], strides = [1, 1]} : vector<17x16xf32> to vector<16x16xf32>
    %24 = vector.extract_strided_slice %22 {offsets = [16, 0], sizes = [1, 16], strides = [1, 1]} : vector<17x16xf32> to vector<1x16xf32>
    %25 = tpu.reciprocal %24 {approx = true} : vector<1x16xf32> -> vector<1x16xf32>
    %26 = vector.broadcast %25 : vector<1x16xf32> to vector<16x16xf32>
    %27 = arith.mulf %23, %26 : vector<16x16xf32>
    %c0_16 = arith.constant 0 : index
    %c0_17 = arith.constant 0 : index
    %c0_18 = arith.constant 0 : index
    %28 = vector.load %arg5[%c0_16, %c0_17, %c0_18] : memref<4x16x16xf32, #tpu.memory_space<vmem>>, vector<1x16x16xf32>
    %29 = vector.shape_cast %28 : vector<1x16x16xf32> to vector<16x16xf32>
    %30 = vector.shape_cast %27 : vector<16x16xf32> to vector<1x16x16xf32>
    tpu.vector_store %arg5[%c0_16, %c0_17, %c0_18], %30 {strides = array<i32>} : memref<4x16x16xf32, #tpu.memory_space<vmem>>, vector<1x16x16xf32>,
    %c1 = arith.constant 1 : index
    %c0_19 = arith.constant 0 : index
    %c0_20 = arith.constant 0 : index
    %31 = vector.load %arg2[%c1, %c0_19, %c0_20] : memref<4x16x16xf32, #tpu.memory_space<vmem>>, vector<1x16x16xf32>
    %32 = vector.shape_cast %31 : vector<1x16x16xf32> to vector<16x16xf32>
    %33 = arith.truncf %32 : vector<16x16xf32> to vector<16x16xbf16>
    %c1_21 = arith.constant 1 : index
    %c0_22 = arith.constant 0 : index
    %c0_23 = arith.constant 0 : index
    %34 = vector.load %arg4[%c1_21, %c0_22, %c0_23] : memref<4x16x16xf32, #tpu.memory_space<vmem>>, vector<1x16x16xf32>
    %35 = vector.shape_cast %34 : vector<1x16x16xf32> to vector<16x16xf32>
    %36 = arith.truncf %35 : vector<16x16xf32> to vector<16x16xbf16>
    %c1_24 = arith.constant 1 : index
    %c0_25 = arith.constant 0 : index
    %c0_26 = arith.constant 0 : index
    %37 = vector.load %arg3[%c1_24, %c0_25, %c0_26] : memref<4x16x16xf32, #tpu.memory_space<vmem>>, vector<1x16x16xf32>
    %38 = vector.shape_cast %37 : vector<1x16x16xf32> to vector<16x16xf32>
    %cst_27 = arith.constant dense<0.000000e+00> : vector<128x16xf32>
    %39 = tpu.matmul %0, %33, %cst_27 {dimension_numbers = #tpu.dot_dimension_numbers<[1], [0], [0], [1], [0, 0, 1, 1], [], []>} : vector<128x16xbf16>, vector<16x16xbf16>, vector<128x16xf32> -> vector<128x16xf32>
    %cst_28 = arith.constant dense<0.000000e+00> : vector<128x16xf32>
    %40 = tpu.matmul %0, %36, %cst_28 {dimension_numbers = #tpu.dot_dimension_numbers<[1], [0], [0], [1], [0, 0, 1, 1], [], []>} : vector<128x16xbf16>, vector<16x16xbf16>, vector<128x16xf32> -> vector<128x16xf32>
    %cst_29 = arith.constant 0.000000e+00 : f32
    %41 = vector.broadcast %cst_29 : f32 to vector<128x16xf32>
    %42 = arith.maximumf %39, %41 : vector<128x16xf32>
    %43 = arith.truncf %42 : vector<128x16xf32> to vector<128x16xbf16>
    %cst_30 = arith.constant 0.000000e+00 : f32
    %44 = vector.broadcast %cst_30 : f32 to vector<128x16xf32>
    %45 = arith.maximumf %40, %44 : vector<128x16xf32>
    %46 = arith.truncf %45 : vector<128x16xf32> to vector<128x16xbf16>
    %cst_31 = arith.constant 1.000000e+00 : f32
    %47 = vector.broadcast %cst_31 : f32 to vector<1x16xf32>
    %48 = tpu.concatenate %38, %47 in 0 : vector<16x16xf32>, vector<1x16xf32> -> vector<17x16xf32>
    %49 = arith.truncf %48 : vector<17x16xf32> to vector<17x16xbf16>
    %cst_32 = arith.constant dense<0.000000e+00> : vector<17x128xf32>
    %50 = tpu.matmul %49, %43, %cst_32 {dimension_numbers = #tpu.dot_dimension_numbers<[1], [1], [0], [0], [0, 0, 1, 0], [], []>} : vector<17x16xbf16>, vector<128x16xbf16>, vector<17x128xf32> -> vector<17x128xf32>
    %51 = arith.truncf %50 : vector<17x128xf32> to vector<17x128xbf16>
    %cst_33 = arith.constant dense<0.000000e+00> : vector<17x16xf32>
    %52 = tpu.matmul %51, %46, %cst_33 {dimension_numbers = #tpu.dot_dimension_numbers<[1], [0], [0], [1], [0, 0, 1, 1], [], []>} : vector<17x128xbf16>, vector<128x16xbf16>, vector<17x16xf32> -> vector<17x16xf32>
    %53 = vector.extract_strided_slice %52 {offsets = [0, 0], sizes = [16, 16], strides = [1, 1]} : vector<17x16xf32> to vector<16x16xf32>
    %54 = vector.extract_strided_slice %52 {offsets = [16, 0], sizes = [1, 16], strides = [1, 1]} : vector<17x16xf32> to vector<1x16xf32>
    %55 = tpu.reciprocal %54 {approx = true} : vector<1x16xf32> -> vector<1x16xf32>
    %56 = vector.broadcast %55 : vector<1x16xf32> to vector<16x16xf32>
    %57 = arith.mulf %53, %56 : vector<16x16xf32>
    %c1_34 = arith.constant 1 : index
    %c0_35 = arith.constant 0 : index
    %c0_36 = arith.constant 0 : index
    %58 = vector.load %arg5[%c1_34, %c0_35, %c0_36] : memref<4x16x16xf32, #tpu.memory_space<vmem>>, vector<1x16x16xf32>
    %59 = vector.shape_cast %58 : vector<1x16x16xf32> to vector<16x16xf32>
    %60 = vector.shape_cast %57 : vector<16x16xf32> to vector<1x16x16xf32>
    tpu.vector_store %arg5[%c1_34, %c0_35, %c0_36], %60 {strides = array<i32>} : memref<4x16x16xf32, #tpu.memory_space<vmem>>, vector<1x16x16xf32>,
    %c2 = arith.constant 2 : index
    %c0_37 = arith.constant 0 : index
    %c0_38 = arith.constant 0 : index
    %61 = vector.load %arg2[%c2, %c0_37, %c0_38] : memref<4x16x16xf32, #tpu.memory_space<vmem>>, vector<1x16x16xf32>
    %62 = vector.shape_cast %61 : vector<1x16x16xf32> to vector<16x16xf32>
    %63 = arith.truncf %62 : vector<16x16xf32> to vector<16x16xbf16>
    %c2_39 = arith.constant 2 : index
    %c0_40 = arith.constant 0 : index
    %c0_41 = arith.constant 0 : index
    %64 = vector.load %arg4[%c2_39, %c0_40, %c0_41] : memref<4x16x16xf32, #tpu.memory_space<vmem>>, vector<1x16x16xf32>
    %65 = vector.shape_cast %64 : vector<1x16x16xf32> to vector<16x16xf32>
    %66 = arith.truncf %65 : vector<16x16xf32> to vector<16x16xbf16>
    %c2_42 = arith.constant 2 : index
    %c0_43 = arith.constant 0 : index
    %c0_44 = arith.constant 0 : index
    %67 = vector.load %arg3[%c2_42, %c0_43, %c0_44] : memref<4x16x16xf32, #tpu.memory_space<vmem>>, vector<1x16x16xf32>
    %68 = vector.shape_cast %67 : vector<1x16x16xf32> to vector<16x16xf32>
    %cst_45 = arith.constant dense<0.000000e+00> : vector<128x16xf32>
    %69 = tpu.matmul %0, %63, %cst_45 {dimension_numbers = #tpu.dot_dimension_numbers<[1], [0], [0], [1], [0, 0, 1, 1], [], []>} : vector<128x16xbf16>, vector<16x16xbf16>, vector<128x16xf32> -> vector<128x16xf32>
    %cst_46 = arith.constant dense<0.000000e+00> : vector<128x16xf32>
    %70 = tpu.matmul %0, %66, %cst_46 {dimension_numbers = #tpu.dot_dimension_numbers<[1], [0], [0], [1], [0, 0, 1, 1], [], []>} : vector<128x16xbf16>, vector<16x16xbf16>, vector<128x16xf32> -> vector<128x16xf32>
    %cst_47 = arith.constant 0.000000e+00 : f32
    %71 = vector.broadcast %cst_47 : f32 to vector<128x16xf32>
    %72 = arith.maximumf %69, %71 : vector<128x16xf32>
    %73 = arith.truncf %72 : vector<128x16xf32> to vector<128x16xbf16>
    %cst_48 = arith.constant 0.000000e+00 : f32
    %74 = vector.broadcast %cst_48 : f32 to vector<128x16xf32>
    %75 = arith.maximumf %70, %74 : vector<128x16xf32>
    %76 = arith.truncf %75 : vector<128x16xf32> to vector<128x16xbf16>
    %cst_49 = arith.constant 1.000000e+00 : f32
    %77 = vector.broadcast %cst_49 : f32 to vector<1x16xf32>
    %78 = tpu.concatenate %68, %77 in 0 : vector<16x16xf32>, vector<1x16xf32> -> vector<17x16xf32>
    %79 = arith.truncf %78 : vector<17x16xf32> to vector<17x16xbf16>
    %cst_50 = arith.constant dense<0.000000e+00> : vector<17x128xf32>
    %80 = tpu.matmul %79, %73, %cst_50 {dimension_numbers = #tpu.dot_dimension_numbers<[1], [1], [0], [0], [0, 0, 1, 0], [], []>} : vector<17x16xbf16>, vector<128x16xbf16>, vector<17x128xf32> -> vector<17x128xf32>
    %81 = arith.truncf %80 : vector<17x128xf32> to vector<17x128xbf16>
    %cst_51 = arith.constant dense<0.000000e+00> : vector<17x16xf32>
    %82 = tpu.matmul %81, %76, %cst_51 {dimension_numbers = #tpu.dot_dimension_numbers<[1], [0], [0], [1], [0, 0, 1, 1], [], []>} : vector<17x128xbf16>, vector<128x16xbf16>, vector<17x16xf32> -> vector<17x16xf32>
    %83 = vector.extract_strided_slice %82 {offsets = [0, 0], sizes = [16, 16], strides = [1, 1]} : vector<17x16xf32> to vector<16x16xf32>
    %84 = vector.extract_strided_slice %82 {offsets = [16, 0], sizes = [1, 16], strides = [1, 1]} : vector<17x16xf32> to vector<1x16xf32>
    %85 = tpu.reciprocal %84 {approx = true} : vector<1x16xf32> -> vector<1x16xf32>
    %86 = vector.broadcast %85 : vector<1x16xf32> to vector<16x16xf32>
    %87 = arith.mulf %83, %86 : vector<16x16xf32>
    %c2_52 = arith.constant 2 : index
    %c0_53 = arith.constant 0 : index
    %c0_54 = arith.constant 0 : index
    %88 = vector.load %arg5[%c2_52, %c0_53, %c0_54] : memref<4x16x16xf32, #tpu.memory_space<vmem>>, vector<1x16x16xf32>
    %89 = vector.shape_cast %88 : vector<1x16x16xf32> to vector<16x16xf32>
    %90 = vector.shape_cast %87 : vector<16x16xf32> to vector<1x16x16xf32>
    tpu.vector_store %arg5[%c2_52, %c0_53, %c0_54], %90 {strides = array<i32>} : memref<4x16x16xf32, #tpu.memory_space<vmem>>, vector<1x16x16xf32>,
    %c3 = arith.constant 3 : index
    %c0_55 = arith.constant 0 : index
    %c0_56 = arith.constant 0 : index
    %91 = vector.load %arg2[%c3, %c0_55, %c0_56] : memref<4x16x16xf32, #tpu.memory_space<vmem>>, vector<1x16x16xf32>
    %92 = vector.shape_cast %91 : vector<1x16x16xf32> to vector<16x16xf32>
    %93 = arith.truncf %92 : vector<16x16xf32> to vector<16x16xbf16>
    %c3_57 = arith.constant 3 : index
    %c0_58 = arith.constant 0 : index
    %c0_59 = arith.constant 0 : index
    %94 = vector.load %arg4[%c3_57, %c0_58, %c0_59] : memref<4x16x16xf32, #tpu.memory_space<vmem>>, vector<1x16x16xf32>
    %95 = vector.shape_cast %94 : vector<1x16x16xf32> to vector<16x16xf32>
    %96 = arith.truncf %95 : vector<16x16xf32> to vector<16x16xbf16>
    %c3_60 = arith.constant 3 : index
    %c0_61 = arith.constant 0 : index
    %c0_62 = arith.constant 0 : index
    %97 = vector.load %arg3[%c3_60, %c0_61, %c0_62] : memref<4x16x16xf32, #tpu.memory_space<vmem>>, vector<1x16x16xf32>
    %98 = vector.shape_cast %97 : vector<1x16x16xf32> to vector<16x16xf32>
    %cst_63 = arith.constant dense<0.000000e+00> : vector<128x16xf32>
    %99 = tpu.matmul %0, %93, %cst_63 {dimension_numbers = #tpu.dot_dimension_numbers<[1], [0], [0], [1], [0, 0, 1, 1], [], []>} : vector<128x16xbf16>, vector<16x16xbf16>, vector<128x16xf32> -> vector<128x16xf32>
    %cst_64 = arith.constant dense<0.000000e+00> : vector<128x16xf32>
    %100 = tpu.matmul %0, %96, %cst_64 {dimension_numbers = #tpu.dot_dimension_numbers<[1], [0], [0], [1], [0, 0, 1, 1], [], []>} : vector<128x16xbf16>, vector<16x16xbf16>, vector<128x16xf32> -> vector<128x16xf32>
    %cst_65 = arith.constant 0.000000e+00 : f32
    %101 = vector.broadcast %cst_65 : f32 to vector<128x16xf32>
    %102 = arith.maximumf %99, %101 : vector<128x16xf32>
    %103 = arith.truncf %102 : vector<128x16xf32> to vector<128x16xbf16>
    %cst_66 = arith.constant 0.000000e+00 : f32
    %104 = vector.broadcast %cst_66 : f32 to vector<128x16xf32>
    %105 = arith.maximumf %100, %104 : vector<128x16xf32>
    %106 = arith.truncf %105 : vector<128x16xf32> to vector<128x16xbf16>
    %cst_67 = arith.constant 1.000000e+00 : f32
    %107 = vector.broadcast %cst_67 : f32 to vector<1x16xf32>
    %108 = tpu.concatenate %98, %107 in 0 : vector<16x16xf32>, vector<1x16xf32> -> vector<17x16xf32>
    %109 = arith.truncf %108 : vector<17x16xf32> to vector<17x16xbf16>
    %cst_68 = arith.constant dense<0.000000e+00> : vector<17x128xf32>
    %110 = tpu.matmul %109, %103, %cst_68 {dimension_numbers = #tpu.dot_dimension_numbers<[1], [1], [0], [0], [0, 0, 1, 0], [], []>} : vector<17x16xbf16>, vector<128x16xbf16>, vector<17x128xf32> -> vector<17x128xf32>
    %111 = arith.truncf %110 : vector<17x128xf32> to vector<17x128xbf16>
    %cst_69 = arith.constant dense<0.000000e+00> : vector<17x16xf32>
    %112 = tpu.matmul %111, %106, %cst_69 {dimension_numbers = #tpu.dot_dimension_numbers<[1], [0], [0], [1], [0, 0, 1, 1], [], []>} : vector<17x128xbf16>, vector<128x16xbf16>, vector<17x16xf32> -> vector<17x16xf32>
    %113 = vector.extract_strided_slice %112 {offsets = [0, 0], sizes = [16, 16], strides = [1, 1]} : vector<17x16xf32> to vector<16x16xf32>
    %114 = vector.extract_strided_slice %112 {offsets = [16, 0], sizes = [1, 16], strides = [1, 1]} : vector<17x16xf32> to vector<1x16xf32>
    %115 = tpu.reciprocal %114 {approx = true} : vector<1x16xf32> -> vector<1x16xf32>
    %116 = vector.broadcast %115 : vector<1x16xf32> to vector<16x16xf32>
    %117 = arith.mulf %113, %116 : vector<16x16xf32>
    %c3_70 = arith.constant 3 : index
    %c0_71 = arith.constant 0 : index
    %c0_72 = arith.constant 0 : index
    %118 = vector.load %arg5[%c3_70, %c0_71, %c0_72] : memref<4x16x16xf32, #tpu.memory_space<vmem>>, vector<1x16x16xf32>
    %119 = vector.shape_cast %118 : vector<1x16x16xf32> to vector<16x16xf32>
    %120 = vector.shape_cast %117 : vector<16x16xf32> to vector<1x16x16xf32>
    tpu.vector_store %arg5[%c3_70, %c0_71, %c0_72], %120 {strides = array<i32>} : memref<4x16x16xf32, #tpu.memory_space<vmem>>, vector<1x16x16xf32>,
    return
  }
  func.func @transform_0(%arg0: i32) -> (i32, i32) {
    %c0_i32 = arith.constant 0 : i32
    %c0_i32_0 = arith.constant 0 : i32
    %c0_i32_1 = arith.constant 0 : i32
    return %c0_i32, %c0_i32_0 : i32, i32
  }
  func.func @transform_1(%arg0: i32) -> (i32, i32, i32) {
    %c0_i32 = arith.constant 0 : i32
    %c0_i32_0 = arith.constant 0 : i32
    %c0_i32_1 = arith.constant 0 : i32
    return %arg0, %c0_i32, %c0_i32_0 : i32, i32, i32
  }
  func.func @transform_2(%arg0: i32) -> (i32, i32, i32) {
    %c0_i32 = arith.constant 0 : i32
    %c0_i32_0 = arith.constant 0 : i32
    %c0_i32_1 = arith.constant 0 : i32
    return %arg0, %c0_i32, %c0_i32_0 : i32, i32, i32
  }
  func.func @transform_3(%arg0: i32) -> (i32, i32, i32) {
    %c0_i32 = arith.constant 0 : i32
    %c0_i32_0 = arith.constant 0 : i32
    %c0_i32_1 = arith.constant 0 : i32
    return %arg0, %c0_i32, %c0_i32_0 : i32, i32, i32
  }
  func.func @transform_4(%arg0: i32) -> (i32, i32, i32) {
    %c0_i32 = arith.constant 0 : i32
    %c0_i32_0 = arith.constant 0 : i32
    %c0_i32_1 = arith.constant 0 : i32
    return %arg0, %c0_i32, %c0_i32_0 : i32, i32, i32
  }
}

</mosaic_0001>

<bundles_post_ra>
// kernel: tpu_custom_call.1
= control target key start
LH: loop header
LB: loop body
LE: loop exit
PB: predicated region body
PF: predicated region fallthrough
CT: control target
= control target key end

     0   :  { %9 = vsyncpa [#allocation3], 0  ;;  %s2788_s0 = inlined_call_operand.hbm [shape: bf16[128,16], index: 0, kind: input, shape index: {}]   ;;  %s2789_s1 = inlined_call_operand.hbm [shape: f32[4,16,16], index: 1, kind: input, shape index: {}]   ;;  %s2790_s2 = inlined_call_operand.hbm [shape: f32[4,16,16], index: 2, kind: input, shape index: {}]   ;;  %s2791_s3 = inlined_call_operand.hbm [shape: f32[4,16,16], index: 3, kind: input, shape index: {}]   ;;  %s2792_s4 = inlined_call_operand.hbm [shape: f32[4,16,16], index: 4, kind: output, shape index: {}]  }
   0x1   :  { %10 = vsyncpa [#allocation6], 0 }
   0x2   :  { %11 = vsyncpa [#allocation9], 0 }
   0x3   :  { %12 = vsyncpa [#allocation4], 0  ;;  %s2450_s15 = smov [#allocation5]   ;;  %s2332_s19 = scalar_lea.hbm %s2789_s1, 1024 }
   0x4   :  { %s30_s16 = sshll.u32 %s2450_s15, 4  ;;  %p2333_p0 = scmp.ne.s32.totalorder %s2789_s1, %s2332_s19  ;;  %s31_s16 = int_to_ptr.vmem [resolvable:$true] %s30_s16 }
   0x5   :  { %p2336_p1 = scmp.lt.u32.totalorder %s2332_s19, %s2789_s1 }
   0x7   :  { %p2338_p2 = pnand %p2336_p1, %p2333_p0 }
   0x9   :  { %2341 = shalt.err (!%p2338_p2)
}
   0xa   :  { %s2342_s24 = scalar_lea.vmem %s31_s16, 1024  ;;  %p2347_p4 = scmp.lt.s32.totalorder %s31_s16, %s31_s16 }
   0xb   :  { %p2343_p3 = scmp.ne.s32.totalorder %s31_s16, %s2342_s24  ;;  %p2348_p5 = scmp.lt.s32.totalorder %s2342_s24, %s2342_s24 }
   0xd   :  { %p2349_p6 = por %p2348_p5, %p2347_p4 }
   0xf   :  { %p2350_p7 = pnand %p2349_p6, %p2343_p3 }
  0x11   :  { %2353 = shalt.err (!%p2350_p7)
}
  0x12   :  { %s2451_s25 = smov 128   ;;  %s2452_s26 = smov 8  }
  0x13   :  { %36 = dma.hbm_to_vmem [thread:$0]  %s2789_s1, 1024, %s31_s16, [#allocation6], %s2451_s25, %s2451_s25, %s2452_s26  }
  0x14   :  { %s2453_s29 = smov [#allocation2]   ;;  %s2354_s7 = scalar_lea.hbm %s2788_s0, 1024 }
  0x15   :  { %s18_s30 = sshll.u32 %s2453_s29, 4  ;;  %p2355_p8 = scmp.ne.s32.totalorder %s2788_s0, %s2354_s7  ;;  %s19_s30 = int_to_ptr.vmem [resolvable:$true] %s18_s30 }
  0x16   :  { %p2358_p9 = scmp.lt.u32.totalorder %s2354_s7, %s2788_s0 }
  0x18   :  { %p2360_p10 = pnand %p2358_p9, %p2355_p8 }
  0x1a   :  { %2363 = shalt.err (!%p2360_p10)
}
  0x1b   :  { %s2364_s12 = scalar_lea.vmem %s19_s30, 1024  ;;  %p2369_p12 = scmp.lt.s32.totalorder %s19_s30, %s19_s30 }
  0x1c   :  { %p2365_p11 = scmp.ne.s32.totalorder %s19_s30, %s2364_s12  ;;  %p2370_p13 = scmp.lt.s32.totalorder %s2364_s12, %s2364_s12 }
  0x1e   :  { %p2371_p0 = por %p2370_p13, %p2369_p12 }
  0x20   :  { %p2372_p1 = pnand %p2371_p0, %p2365_p11 }
  0x22   :  { %2375 = shalt.err (!%p2372_p1)
}
  0x23   :  { %s2454_s1 = smov 64   ;;  %s2455_s13 = smov 4  }
  0x24   :  { %24 = dma.hbm_to_vmem [thread:$0]  %s2788_s0, 1024, %s19_s30, [#allocation3], %s2454_s1, %s2454_s1, %s2455_s13  }
  0x25   :  { %s2456_s16 = smov [#allocation7]   ;;  %s2457_s18 = smov [#allocation8]  }
  0x26   :  { %s42_s17 = sshll.u32 %s2456_s16, 4  ;;  %s54_s19 = sshll.u32 %s2457_s18, 4  ;;  %s43_s17 = int_to_ptr.vmem [resolvable:$true] %s42_s17  ;;  %s2512_s19 = int_to_ptr.vmem [resolvable:$true] %s54_s19 }
  0x27   :  { %s2376_s22 = scalar_lea.hbm %s2790_s2, 1024 }
  0x28   :  { %p2377_p2 = scmp.ne.s32.totalorder %s2790_s2, %s2376_s22  ;;  %p2380_p3 = scmp.lt.u32.totalorder %s2376_s22, %s2790_s2 }
  0x2a   :  { %p2382_p4 = pnand %p2380_p3, %p2377_p2 }
  0x2c   :  { %2385 = shalt.err (!%p2382_p4)
}
  0x2d   :  { %s2386_s0 = scalar_lea.vmem %s43_s17, 1024  ;;  %p2391_p6 = scmp.lt.s32.totalorder %s43_s17, %s43_s17 }
  0x2e   :  { %p2387_p5 = scmp.ne.s32.totalorder %s43_s17, %s2386_s0  ;;  %p2392_p7 = scmp.lt.s32.totalorder %s2386_s0, %s2386_s0 }
  0x30   :  { %p2393_p8 = por %p2392_p7, %p2391_p6 }
  0x32   :  { %p2394_p9 = pnand %p2393_p8, %p2387_p5 }
  0x34   :  { %2397 = shalt.err (!%p2394_p9)
}
  0x35   :  { %48 = dma.hbm_to_vmem [thread:$0]  %s2790_s2, 1024, %s43_s17, [#allocation6], %s2451_s25, %s2451_s25, %s2452_s26  }
  0x36   :  { %s2398_s7 = scalar_lea.hbm %s2791_s3, 1024 }
  0x37   :  { %p2399_p10 = scmp.ne.s32.totalorder %s2791_s3, %s2398_s7  ;;  %p2402_p11 = scmp.lt.u32.totalorder %s2398_s7, %s2791_s3 }
  0x39   :  { %p2404_p12 = pnand %p2402_p11, %p2399_p10 }
  0x3b   :  { %2407 = shalt.err (!%p2404_p12)
}
  0x3c   :  { %s2408_s12 = scalar_lea.vmem %s2512_s19, 1024  ;;  %p2413_p0 = scmp.lt.s32.totalorder %s2512_s19, %s2512_s19 }
  0x3d   :  { %p2409_p13 = scmp.ne.s32.totalorder %s2512_s19, %s2408_s12  ;;  %p2414_p1 = scmp.lt.s32.totalorder %s2408_s12, %s2408_s12 }
  0x3f   :  { %p2415_p2 = por %p2414_p1, %p2413_p0 }
  0x41   :  { %p2416_p3 = pnand %p2415_p2, %p2409_p13 }
  0x43   :  { %2419 = shalt.err (!%p2416_p3)
}
  0x44   :  { %60 = dma.hbm_to_vmem [thread:$0]  %s2791_s3, 1024, %s2512_s19, [#allocation9], %s2451_s25, %s2451_s25, %s2452_s26  }
  0x45   :  { %2442 = dma.done.wait [#allocation3], 1024  }
  0x46   :  { %2443 = vsyncadd [#allocation3], 4294966272 }
  0x47   :  { %2444 = dma.done.wait [#allocation6], 2048  }
  0x48   :  { %2445 = vsyncadd [#allocation6], 4294965248 }
  0x49   :  { %2446 = dma.done.wait [#allocation9], 1024  }
  0x4a   :  { %2447 = vsyncadd [#allocation9], 4294966272  ;;  %v90_v0 = vld [vmem:[#allocation5] sm:$0xff]  ;;  %v91_v1 = vld [vmem:[#allocation5 + $0x8] sm:$0xff]  ;;  %vm138_vm0 = vcmask 130048   ;;  %s2459_s3 = smov [#allocation10]  }
  0x4b   :  { %v92_v2 = vpack.c.bf16 %v91_v1, %v90_v0  ;;  %v2549_v3 = vld [vmem:[#allocation2] sm:$0xff]   ;;  %v2553_v4 = vld [vmem:[#allocation2 + $0x8] sm:$0xff]   ;;  %v2555_v5 = vld [vmem:[#allocation2 + $0x10] sm:$0xff]   ;;  %v2458_v1 = vmov 1.0|1.0   ;;  %s1716_s13 = sshll.u32 %s2459_s3, 4  ;;  %s1717_s13 = int_to_ptr.vmem [resolvable:$true] %s1716_s13 }
  0x4c   :  { %1964 = vmatprep.mubr.msk.bf16.mxu0 %vm138_vm0, %v2549_v3  ;;  %1982 = vmatprep.mubr.msk.bf16.mxu1 %vm138_vm0, %v2549_v3  ;;  %v2563_v6 = vld [vmem:[#allocation2 + $0x18] sm:$0xff]   ;;  %v2565_v7 = vld [vmem:[#allocation2 + $0x20] sm:$0xff]   ;;  %v2571_v8 = vld [vmem:[#allocation2 + $0x28] sm:$0xff]   ;;  %s2420_s14 = scalar_lea.vmem %s1717_s13, 1024  ;;  %p2425_p5 = scmp.lt.s32.totalorder %s1717_s13, %s1717_s13 }
  0x4d   :  { %1962 = vmatprep.subr.bf16.mxu0 %v92_v2  ;;  %v2573_v9 = vld [vmem:[#allocation2 + $0x30] sm:$0xff]   ;;  %v2579_v10 = vld [vmem:[#allocation2 + $0x38] sm:$0xff]   ;;  %v93_v11 = vld [vmem:[#allocation8] sm:$0xff]  ;;  %p2421_p4 = scmp.ne.s32.totalorder %s1717_s13, %s2420_s14  ;;  %p2426_p6 = scmp.lt.s32.totalorder %s2420_s14, %s2420_s14 }
  0x4e   :  { %1963 = vmatpush3.bf16.msra.mxu0 %v92_v2  ;;  %v94_v12 = vld [vmem:[#allocation8 + $0x8] sm:$0xff]  ;;  %v96_v14 = vld [vmem:[#allocation7] sm:$0xff] }
  0x4f   :  { %v95_v13 = vpack.c.bf16 %v94_v12, %v93_v11  ;;  %v97_v15 = vld [vmem:[#allocation7 + $0x8] sm:$0xff]  ;;  %p2427_p7 = por %p2426_p6, %p2425_p5 }
  0x50   :  { %v405_v16 = vpack.c.bf16 %v97_v15, %v96_v14 }
  0x51   :  { %1965 = vmatmul.mubr.msk.bf16.vlgmr.msra.gmra.mrb[0].mxu0 %vm138_vm0, %v2553_v4  ;;  %1980 = vmatprep.subr.bf16.mxu1 %v95_v13  ;;  %p2428_p8 = pnand %p2427_p7, %p2421_p4 }
  0x52   :  { %1968 = vmatprep.mubr.msk.bf16.mxu0 %vm138_vm0, %v2555_v5  ;;  %1981 = vmatpush3.bf16.msra.mxu1 %v95_v13 }
  0x55   :  { %1983 = vmatmul.mubr.msk.bf16.vlgmr.msra.gmra.mrb[0].mxu1 %vm138_vm0, %v2553_v4 }
  0x56   :  { %1986 = vmatprep.mubr.msk.bf16.mxu1 %vm138_vm0, %v2555_v5 }
  0x59   :  { %1969 = vmatmul.mubr.msk.bf16.gmra.mrb[4].mxu0 %vm138_vm0, %v2563_v6 }
  0x5a   :  { %1972 = vmatprep.mubr.msk.bf16.mxu0 %vm138_vm0, %v2565_v7 }
  0x5d   :  { %1987 = vmatmul.mubr.msk.bf16.gmra.mrb[4].mxu1 %vm138_vm0, %v2563_v6 }
  0x5e   :  { %1990 = vmatprep.mubr.msk.bf16.mxu1 %vm138_vm0, %v2565_v7 }
  0x61   :  { %1973 = vmatmul.mubr.msk.bf16.gmra.mrb[8].mxu0 %vm138_vm0, %v2571_v8 }
  0x62   :  { %1976 = vmatprep.mubr.msk.bf16.mxu0 %vm138_vm0, %v2573_v9 }
  0x65   :  { %1991 = vmatmul.mubr.msk.bf16.gmra.mrb[8].mxu1 %vm138_vm0, %v2571_v8 }
  0x66   :  { %1994 = vmatprep.mubr.msk.bf16.mxu1 %vm138_vm0, %v2573_v9 }
  0x69   :  { %1977 = vmatmul.mubr.msk.bf16.gmra.mrb[12].mxu0 %vm138_vm0, %v2579_v10 }
  0x6a   :  { %2014 = vmatprep.mubr.msk.bf16.mxu0 %vm138_vm0, %v405_v16 }
  0x6d   :  { %1995 = vmatmul.mubr.msk.bf16.gmra.mrb[12].mxu1 %vm138_vm0, %v2579_v10 }
 0x124   :  { %v1966_v17 = vpop.f32.mrb[0].mxu0 }
 0x125   :  { %v197_v18 = vpop.f32.mrb[1].mxu0  ;;  %v359_v20 = vmax.f32 %v1966_v17, 0.0 }
 0x126   :  { %v1967_v19 = vpop.f32.mrb[2].mxu0  ;;  %v357_v23 = vmax.f32 %v197_v18, 0.0 }
 0x127   :  { %v360_v21 = vmax.f32 %v1967_v19, 0.0  ;;  %v200_v22 = vpop.f32.mrb[3].mxu0 }
 0x128   :  { %v358_v24 = vmax.f32 %v200_v22, 0.0  ;;  %v1984_v2 = vpop.f32.mrb[0].mxu1 }
 0x129   :  { %v374_v25 = vpack.c.bf16 %v360_v21, %v359_v20  ;;  %v383_v11 = vmax.f32 %v1984_v2, 0.0  ;;  %v294_v12 = vpop.f32.mrb[1].mxu1 }
 0x12a   :  { %v373_v26 = vpack.c.bf16 %v358_v24, %v357_v23  ;;  %v381_v13 = vmax.f32 %v294_v12, 0.0  ;;  %v1985_v14 = vpop.f32.mrb[2].mxu1 }
 0x12b   :  { %v417_v38 = vsel %vm138_vm0, %v374_v25, 0  ;;  %v384_v15 = vmax.f32 %v1985_v14, 0.0  ;;  %v297_v16 = vpop.f32.mrb[3].mxu1 }
 0x12c   :  { %2266 = vmatprep.subr.msk.bf16.mxu0 %vm138_vm0, %v373_v26  ;;  %v414_v27 = vsel %vm138_vm0, %v373_v26, 0  ;;  %v1970_v28 = vpop.f32.mrb[4].mxu0  ;;  %v382_v17 = vmax.f32 %v297_v16, 0.0 }
 0x12d   :  { %1999 = vmatpush3.bf16.xpose.msra.mxu0 %v414_v27  ;;  %v363_v29 = vmax.f32 %v1970_v28, 0.0  ;;  %v213_v30 = vpop.f32.mrb[5].mxu0  ;;  %v398_v18 = vpack.c.bf16 %v384_v15, %v383_v11  ;;  %v536_v11 = vlaneseq }
 0x12e   :  { %2267 = vmatprep.subr.msk.bf16.mxu0 %vm138_vm0, %v374_v25  ;;  %v361_v31 = vmax.f32 %v213_v30, 0.0  ;;  %v1971_v32 = vpop.f32.mrb[6].mxu0  ;;  %v397_v19 = vpack.c.bf16 %v382_v17, %v381_v13 }
 0x12f   :  { %v364_v33 = vmax.f32 %v1971_v32, 0.0  ;;  %v216_v34 = vpop.f32.mrb[7].mxu0  ;;  %v537_v15 = vshrl.u32 %v536_v11, 7 }
 0x130   :  { %v362_v35 = vmax.f32 %v216_v34, 0.0  ;;  %v1988_v20 = vpop.f32.mrb[4].mxu1  ;;  %2018 = vmatprep.subr.bf16.mxu1 %v397_v19 }
 0x131   :  { %v376_v36 = vpack.c.bf16 %v364_v33, %v363_v29  ;;  %v387_v21 = vmax.f32 %v1988_v20, 0.0  ;;  %v310_v22 = vpop.f32.mrb[5].mxu1  ;;  %2019 = vmatpush3.bf16.msra.mxu1 %v397_v19  ;;  %v2649_v16 = vsub.s32 0, %v537_v15 }
 0x132   :  { %v375_v37 = vpack.c.bf16 %v362_v35, %v361_v31  ;;  %v385_v23 = vmax.f32 %v310_v22, 0.0  ;;  %v1989_v24 = vpop.f32.mrb[6].mxu1  ;;  %2020 = vmatprep.subr.bf16.mxu1 %v398_v18 }
 0x133   :  { %v423_v60 = vsel %vm138_vm0, %v376_v36, 0  ;;  %v388_v25 = vmax.f32 %v1989_v24, 0.0  ;;  %v313_v26 = vpop.f32.mrb[7].mxu1 }
 0x134   :  { %v1974_v39 = vpop.f32.mrb[8].mxu0  ;;  %v420_v49 = vsel %vm138_vm0, %v375_v37, 0  ;;  %v386_v27 = vmax.f32 %v313_v26, 0.0 }
 0x135   :  { %2001 = vmatpush3.bf16.xpose.msra.mxu0 %v417_v38  ;;  %v367_v40 = vmax.f32 %v1974_v39, 0.0  ;;  %v229_v41 = vpop.f32.mrb[9].mxu0  ;;  %v400_v28 = vpack.c.bf16 %v388_v25, %v387_v21  ;;  %2021 = vmatpush3.bf16.msra.mxu1 %v398_v18 }
 0x136   :  { %2268 = vmatprep.subr.msk.bf16.mxu0 %vm138_vm0, %v375_v37  ;;  %v365_v42 = vmax.f32 %v229_v41, 0.0  ;;  %v1975_v43 = vpop.f32.mrb[10].mxu0  ;;  %v399_v29 = vpack.c.bf16 %v386_v27, %v385_v23 }
 0x137   :  { %v368_v44 = vmax.f32 %v1975_v43, 0.0  ;;  %v232_v45 = vpop.f32.mrb[11].mxu0 }
 0x138   :  { %v366_v46 = vmax.f32 %v232_v45, 0.0  ;;  %v1992_v30 = vpop.f32.mrb[8].mxu1  ;;  %2022 = vmatprep.subr.bf16.mxu1 %v399_v29 }
 0x139   :  { %v378_v47 = vpack.c.bf16 %v368_v44, %v367_v40  ;;  %v391_v31 = vmax.f32 %v1992_v30, 0.0  ;;  %v326_v32 = vpop.f32.mrb[9].mxu1  ;;  %2023 = vmatpush3.bf16.msra.mxu1 %v399_v29 }
 0x13a   :  { %v377_v48 = vpack.c.bf16 %v366_v46, %v365_v42  ;;  %v389_v33 = vmax.f32 %v326_v32, 0.0  ;;  %v1993_v34 = vpop.f32.mrb[10].mxu1  ;;  %2024 = vmatprep.subr.bf16.mxu1 %v400_v28 }
 0x13b   :  { %v429_v62 = vsel %vm138_vm0, %v378_v47, 0  ;;  %v392_v35 = vmax.f32 %v1993_v34, 0.0 }
 0x13c   :  { %v1978_v50 = vpop.f32.mrb[12].mxu0  ;;  %v426_v61 = vsel %vm138_vm0, %v377_v48, 0 }
 0x13d   :  { %2003 = vmatpush3.bf16.xpose.msra.mxu0 %v420_v49  ;;  %v371_v51 = vmax.f32 %v1978_v50, 0.0  ;;  %v245_v52 = vpop.f32.mrb[13].mxu0  ;;  %v402_v38 = vpack.c.bf16 %v392_v35, %v391_v31  ;;  %2025 = vmatpush3.bf16.msra.mxu1 %v400_v28  ;;  %v545_v50 = vld [vmem:[#allocation5 + $0x10] sm:$0xff] }
 0x13e   :  { %2269 = vmatprep.subr.msk.bf16.mxu0 %vm138_vm0, %v376_v36  ;;  %v369_v53 = vmax.f32 %v245_v52, 0.0  ;;  %v1979_v54 = vpop.f32.mrb[14].mxu0  ;;  %v329_v36 = vpop.f32.mrb[11].mxu1 }
 0x13f   :  { %v372_v55 = vmax.f32 %v1979_v54, 0.0  ;;  %v248_v56 = vpop.f32.mrb[15].mxu0  ;;  %v390_v37 = vmax.f32 %v329_v36, 0.0 }
 0x140   :  { %v370_v57 = vmax.f32 %v248_v56, 0.0  ;;  %v1996_v40 = vpop.f32.mrb[12].mxu1 }
 0x141   :  { %v380_v58 = vpack.c.bf16 %v372_v55, %v371_v51  ;;  %v401_v39 = vpack.c.bf16 %v390_v37, %v389_v33  ;;  %v395_v41 = vmax.f32 %v1996_v40, 0.0  ;;  %v342_v42 = vpop.f32.mrb[13].mxu1  ;;  %v546_v51 = vld [vmem:[#allocation5 + $0x18] sm:$0xff] }
 0x142   :  { %v379_v59 = vpack.c.bf16 %v370_v57, %v369_v53  ;;  %v393_v43 = vmax.f32 %v342_v42, 0.0  ;;  %v1997_v44 = vpop.f32.mrb[14].mxu1  ;;  %v547_v52 = vpack.c.bf16 %v546_v51, %v545_v50 }
 0x143   :  { %v435_v0 = vsel %vm138_vm0, %v380_v58, 0  ;;  %2026 = vmatprep.subr.bf16.mxu1 %v401_v39  ;;  %v396_v45 = vmax.f32 %v1997_v44, 0.0  ;;  %v345_v46 = vpop.f32.mrb[15].mxu1 }
 0x144   :  { %v432_v63 = vsel %vm138_vm0, %v379_v59, 0  ;;  %2027 = vmatpush3.bf16.msra.mxu1 %v401_v39 }
 0x145   :  { %2005 = vmatpush3.bf16.xpose.msra.mxu0 %v423_v60  ;;  %2028 = vmatprep.subr.bf16.mxu1 %v402_v38  ;;  %v550_v60 = vld [vmem:[#allocation8 + $0x18] sm:$0xff] }
 0x146   :  { %2270 = vmatprep.subr.msk.bf16.mxu0 %vm138_vm0, %v377_v48  ;;  %v404_v48 = vpack.c.bf16 %v396_v45, %v395_v41 }
 0x148   :  { %2029 = vmatpush3.bf16.msra.mxu1 %v402_v38 }
 0x14d   :  { %2007 = vmatpush3.bf16.xpose.msra.mxu0 %v426_v61 }
 0x14e   :  { %2271 = vmatprep.subr.msk.bf16.mxu0 %vm138_vm0, %v378_v47  ;;  %v394_v47 = vmax.f32 %v345_v46, 0.0 }
 0x150   :  { %v403_v49 = vpack.c.bf16 %v394_v47, %v393_v43 }
 0x152   :  { %2030 = vmatprep.subr.bf16.mxu1 %v403_v49 }
 0x153   :  { %2031 = vmatpush3.bf16.msra.mxu1 %v403_v49 }
 0x154   :  { %2032 = vmatprep.subr.bf16.mxu1 %v404_v48 }
 0x155   :  { %2009 = vmatpush3.bf16.xpose.msra.mxu0 %v429_v62  ;;  %v553_v62 = vld [vmem:[#allocation7 + $0x10] sm:$0xff] }
 0x156   :  { %2272 = vmatprep.subr.msk.bf16.mxu0 %vm138_vm0, %v379_v59  ;;  %v549_v59 = vld [vmem:[#allocation8 + $0x10] sm:$0xff] }
 0x157   :  { %2033 = vmatpush3.bf16.msra.mxu1 %v404_v48  ;;  %v551_v61 = vpack.c.bf16 %v550_v60, %v549_v59 }
 0x158   :  { %2038 = vmatprep.subr.bf16.mxu1 %v547_v52 }
 0x15d   :  { %2011 = vmatpush3.bf16.xpose.msra.mxu0 %v432_v63  ;;  %v554_v63 = vld [vmem:[#allocation7 + $0x18] sm:$0xff] }
 0x15e   :  { %2273 = vmatprep.subr.msk.bf16.mxu0 %vm138_vm0, %v380_v58 }
 0x165   :  { %2013 = vmatpush3.bf16.xpose.msra.mxu0 %v435_v0  ;;  %v797_v0 = vpack.c.bf16 %v554_v63, %v553_v62 }
 0x166   :  { %2056 = vmatprep.subr.bf16.mxu0 %v551_v61 }
 0x16c   :  { %2015 = vmatmul.mubr.msk.bf16.vlgmr.msra.gmra.mrb[16].mxu0 %vm138_vm0, %v2458_v1 }
 0x16d   :  { %2058 = vmatprep.mubr.msk.bf16.mxu0 %vm138_vm0, %v2549_v3  ;;  %2057 = vmatpush3.bf16.msra.mxu0 %v551_v61 }
 0x174   :  { %2059 = vmatmul.mubr.msk.bf16.vlgmr.msra.gmra.mrb[20].mxu0 %vm138_vm0, %v2553_v4 }
 0x175   :  { %2062 = vmatprep.mubr.msk.bf16.mxu0 %vm138_vm0, %v2555_v5 }
 0x17c   :  { %2063 = vmatmul.mubr.msk.bf16.gmra.mrb[24].mxu0 %vm138_vm0, %v2563_v6 }
 0x17d   :  { %2066 = vmatprep.mubr.msk.bf16.mxu0 %vm138_vm0, %v2565_v7 }
 0x184   :  { %2067 = vmatmul.mubr.msk.bf16.gmra.mrb[28].mxu0 %vm138_vm0, %v2571_v8 }
 0x185   :  { %2070 = vmatprep.mubr.msk.bf16.mxu0 %vm138_vm0, %v2573_v9 }
 0x18c   :  { %2071 = vmatmul.mubr.msk.bf16.gmra.mrb[32].mxu0 %vm138_vm0, %v2579_v10 }
 0x23f   :  { %v2016_v53 = vpop.f32.mrb[16].mxu0 }
 0x240   :  { %v471_v54 = vpop.f32.mrb[17].mxu0  ;;  %v486_v58 = vpack.c.bf16 %v2016_v53, %v2016_v53 }
 0x241   :  { %v2017_v55 = vpop.f32.mrb[18].mxu0 }
 0x242   :  { %v474_v56 = vpop.f32.mrb[19].mxu0 }
 0x243   :  { %v485_v57 = vpack.c.bf16 %v474_v56, %v471_v54 }
 0x245   :  { %2034 = vmatprep.mubr.bf16.mxu1 %v485_v57 }
 0x246   :  { %2035 = vmatmul.mubr.bf16.vlgmr.msra.gmra.mrb[16].mxu1 %v486_v58 }
 0x247   :  { %2039 = vmatpush3.bf16.msra.mxu1 %v547_v52  ;;  %2040 = vmatprep.mubr.msk.bf16.mxu1 %vm138_vm0, %v2549_v3 }
 0x24e   :  { %2041 = vmatmul.mubr.msk.bf16.vlgmr.msra.gmra.mrb[20].mxu1 %vm138_vm0, %v2553_v4 }
 0x24f   :  { %2044 = vmatprep.mubr.msk.bf16.mxu1 %vm138_vm0, %v2555_v5 }
 0x256   :  { %2045 = vmatmul.mubr.msk.bf16.gmra.mrb[24].mxu1 %vm138_vm0, %v2563_v6 }
 0x257   :  { %2048 = vmatprep.mubr.msk.bf16.mxu1 %vm138_vm0, %v2565_v7 }
 0x25e   :  { %2049 = vmatmul.mubr.msk.bf16.gmra.mrb[28].mxu1 %vm138_vm0, %v2571_v8 }
 0x25f   :  { %2052 = vmatprep.mubr.msk.bf16.mxu1 %vm138_vm0, %v2573_v9 }
 0x266   :  { %2053 = vmatmul.mubr.msk.bf16.gmra.mrb[32].mxu1 %vm138_vm0, %v2579_v10 }
 0x267   :  { %2090 = vmatprep.mubr.msk.bf16.mxu1 %vm138_vm0, %v797_v0 }
 0x319   :  { %v2036_v2 = vpop.f32.mrb[16].mxu1 }
 0x31a   :  { %2316 = vrcp.f32 %v2036_v2  ;;  %v521_v12 = vpop.f32.mrb[17].mxu1 }
 0x31b   :  { %v2037_v13 = vpop.f32.mrb[18].mxu1 }
 0x31c   :  { %v524_v14 = vpop.f32.mrb[19].mxu1 }
 0x321   :  { %v2042_v17 = vpop.f32.mrb[20].mxu1 }
 0x322   :  { %v589_v18 = vpop.f32.mrb[21].mxu1  ;;  %v751_v21 = vmax.f32 %v2042_v17, 0.0 }
 0x323   :  { %v2043_v19 = vpop.f32.mrb[22].mxu1  ;;  %v749_v25 = vmax.f32 %v589_v18, 0.0 }
 0x324   :  { %v2317_v20 = vpop.eup %2316  ;;  %v752_v22 = vmax.f32 %v2043_v19, 0.0  ;;  %v592_v23 = vpop.f32.mrb[23].mxu1 }
 0x325   :  { %v539_v24 = vrot.slane %v2317_v20, %v2649_v16  ;;  %v750_v26 = vmax.f32 %v592_v23, 0.0 }
 0x326   :  { %v766_v27 = vpack.c.bf16 %v752_v22, %v751_v21 }
 0x327   :  { %v540_v28 = vmul.f32 %v539_v24, %v521_v12  ;;  %v541_v29 = vmul.f32 %v539_v24, %v524_v14  ;;  %v765_v30 = vpack.c.bf16 %v750_v26, %v749_v25  ;;  %v2060_v14 = vpop.f32.mrb[20].mxu0 }
 0x328   :  { %v805_v42 = vsel %vm138_vm0, %v766_v27, 0  ;;  %v775_v15 = vmax.f32 %v2060_v14, 0.0  ;;  %v686_v17 = vpop.f32.mrb[21].mxu0 }
 0x329   :  { %542 = vst.msk [vmem:[#allocation10] sm:$0xff] %vm138_vm0, %v540_v28  ;;  %543 = vst.msk [vmem:[#allocation10 + $0x8] sm:$0xff] %vm138_vm0, %v541_v29  ;;  %2274 = vmatprep.subr.msk.bf16.mxu1 %vm138_vm0, %v765_v30  ;;  %v802_v31 = vsel %vm138_vm0, %v765_v30, 0  ;;  %v2046_v32 = vpop.f32.mrb[24].mxu1  ;;  %v773_v18 = vmax.f32 %v686_v17, 0.0  ;;  %v2061_v19 = vpop.f32.mrb[22].mxu0 }
 0x32a   :  { %2075 = vmatpush3.bf16.xpose.msra.mxu1 %v802_v31  ;;  %v755_v33 = vmax.f32 %v2046_v32, 0.0  ;;  %v605_v34 = vpop.f32.mrb[25].mxu1  ;;  %v776_v20 = vmax.f32 %v2061_v19, 0.0  ;;  %v689_v21 = vpop.f32.mrb[23].mxu0 }
 0x32b   :  { %2275 = vmatprep.subr.msk.bf16.mxu1 %vm138_vm0, %v766_v27  ;;  %v753_v35 = vmax.f32 %v605_v34, 0.0  ;;  %v2047_v36 = vpop.f32.mrb[26].mxu1  ;;  %v774_v22 = vmax.f32 %v689_v21, 0.0  ;;  %v2064_v25 = vpop.f32.mrb[24].mxu0 }
 0x32c   :  { %v756_v37 = vmax.f32 %v2047_v36, 0.0  ;;  %v608_v38 = vpop.f32.mrb[27].mxu1  ;;  %v790_v23 = vpack.c.bf16 %v776_v20, %v775_v15  ;;  %v779_v26 = vmax.f32 %v2064_v25, 0.0  ;;  %v702_v27 = vpop.f32.mrb[25].mxu0 }
 0x32d   :  { %v754_v39 = vmax.f32 %v608_v38, 0.0  ;;  %v789_v24 = vpack.c.bf16 %v774_v22, %v773_v18  ;;  %v777_v28 = vmax.f32 %v702_v27, 0.0  ;;  %v2065_v29 = vpop.f32.mrb[26].mxu0 }
 0x32e   :  { %v768_v40 = vpack.c.bf16 %v756_v37, %v755_v33  ;;  %v780_v30 = vmax.f32 %v2065_v29, 0.0  ;;  %v705_v31 = vpop.f32.mrb[27].mxu0 }
 0x32f   :  { %v767_v41 = vpack.c.bf16 %v754_v39, %v753_v35  ;;  %2094 = vmatprep.subr.bf16.mxu0 %v789_v24  ;;  %v778_v32 = vmax.f32 %v705_v31, 0.0  ;;  %v2068_v35 = vpop.f32.mrb[28].mxu0 }
 0x330   :  { %v811_v0 = vsel %vm138_vm0, %v768_v40, 0  ;;  %2095 = vmatpush3.bf16.msra.mxu0 %v789_v24  ;;  %v792_v33 = vpack.c.bf16 %v780_v30, %v779_v26  ;;  %v783_v36 = vmax.f32 %v2068_v35, 0.0  ;;  %v718_v37 = vpop.f32.mrb[29].mxu0 }
 0x331   :  { %v2050_v43 = vpop.f32.mrb[28].mxu1  ;;  %v808_v53 = vsel %vm138_vm0, %v767_v41, 0  ;;  %2096 = vmatprep.subr.bf16.mxu0 %v790_v23  ;;  %v791_v34 = vpack.c.bf16 %v778_v32, %v777_v28  ;;  %v781_v38 = vmax.f32 %v718_v37, 0.0  ;;  %v2069_v39 = vpop.f32.mrb[30].mxu0 }
 0x332   :  { %2077 = vmatpush3.bf16.xpose.msra.mxu1 %v805_v42  ;;  %v759_v44 = vmax.f32 %v2050_v43, 0.0  ;;  %v621_v45 = vpop.f32.mrb[29].mxu1 }
 0x333   :  { %2276 = vmatprep.subr.msk.bf16.mxu1 %vm138_vm0, %v767_v41  ;;  %v757_v46 = vmax.f32 %v621_v45, 0.0  ;;  %v2051_v47 = vpop.f32.mrb[30].mxu1  ;;  %v721_v41 = vpop.f32.mrb[31].mxu0 }
 0x334   :  { %v760_v48 = vmax.f32 %v2051_v47, 0.0  ;;  %v624_v49 = vpop.f32.mrb[31].mxu1  ;;  %2097 = vmatpush3.bf16.msra.mxu0 %v790_v23  ;;  %v782_v42 = vmax.f32 %v721_v41, 0.0  ;;  %v2072_v45 = vpop.f32.mrb[32].mxu0 }
 0x335   :  { %v758_v50 = vmax.f32 %v624_v49, 0.0  ;;  %2098 = vmatprep.subr.bf16.mxu0 %v791_v34  ;;  %v734_v47 = vpop.f32.mrb[33].mxu0 }
 0x336   :  { %v770_v51 = vpack.c.bf16 %v760_v48, %v759_v44  ;;  %v793_v44 = vpack.c.bf16 %v782_v42, %v781_v38  ;;  %v785_v48 = vmax.f32 %v734_v47, 0.0  ;;  %v2073_v49 = vpop.f32.mrb[34].mxu0 }
 0x337   :  { %v769_v52 = vpack.c.bf16 %v758_v50, %v757_v46  ;;  %v787_v46 = vmax.f32 %v2072_v45, 0.0  ;;  %v788_v50 = vmax.f32 %v2073_v49, 0.0 }
 0x338   :  { %v817_v11 = vsel %vm138_vm0, %v770_v51, 0  ;;  %2099 = vmatpush3.bf16.msra.mxu0 %v791_v34 }
 0x339   :  { %v2054_v54 = vpop.f32.mrb[32].mxu1  ;;  %v814_v2 = vsel %vm138_vm0, %v769_v52, 0  ;;  %2100 = vmatprep.subr.bf16.mxu0 %v792_v33 }
 0x33a   :  { %2079 = vmatpush3.bf16.xpose.msra.mxu1 %v808_v53  ;;  %v763_v55 = vmax.f32 %v2054_v54, 0.0  ;;  %v637_v56 = vpop.f32.mrb[33].mxu1  ;;  %v796_v53 = vpack.c.bf16 %v788_v50, %v787_v46 }
 0x33b   :  { %2277 = vmatprep.subr.msk.bf16.mxu1 %vm138_vm0, %v768_v40  ;;  %v761_v57 = vmax.f32 %v637_v56, 0.0  ;;  %v2055_v58 = vpop.f32.mrb[34].mxu1  ;;  %v784_v40 = vmax.f32 %v2069_v39, 0.0  ;;  %v935_v56 = vld [vmem:[#allocation5 + $0x28] sm:$0xff] }
 0x33c   :  { %v764_v59 = vmax.f32 %v2055_v58, 0.0  ;;  %v640_v60 = vpop.f32.mrb[35].mxu1  ;;  %2101 = vmatpush3.bf16.msra.mxu0 %v792_v33 }
 0x33d   :  { %v762_v61 = vmax.f32 %v640_v60, 0.0  ;;  %v794_v43 = vpack.c.bf16 %v784_v40, %v783_v36  ;;  %2102 = vmatprep.subr.bf16.mxu0 %v793_v44 }
 0x33e   :  { %v772_v62 = vpack.c.bf16 %v764_v59, %v763_v55  ;;  %v934_v55 = vld [vmem:[#allocation5 + $0x20] sm:$0xff] }
 0x33f   :  { %v771_v63 = vpack.c.bf16 %v762_v61, %v761_v57  ;;  %v936_v57 = vpack.c.bf16 %v935_v56, %v934_v55 }
 0x340   :  { %v823_v13 = vsel %vm138_vm0, %v772_v62, 0  ;;  %2103 = vmatpush3.bf16.msra.mxu0 %v793_v44 }
 0x341   :  { %v820_v12 = vsel %vm138_vm0, %v771_v63, 0  ;;  %2104 = vmatprep.subr.bf16.mxu0 %v794_v43 }
 0x342   :  { %2081 = vmatpush3.bf16.xpose.msra.mxu1 %v811_v0  ;;  %v938_v0 = vld [vmem:[#allocation8 + $0x20] sm:$0xff] }
 0x343   :  { %2278 = vmatprep.subr.msk.bf16.mxu1 %vm138_vm0, %v769_v52 }
 0x344   :  { %2105 = vmatpush3.bf16.msra.mxu0 %v794_v43 }
 0x34a   :  { %2083 = vmatpush3.bf16.xpose.msra.mxu1 %v814_v2  ;;  %v939_v2 = vld [vmem:[#allocation8 + $0x28] sm:$0xff] }
 0x34b   :  { %2279 = vmatprep.subr.msk.bf16.mxu1 %vm138_vm0, %v770_v51  ;;  %v737_v51 = vpop.f32.mrb[35].mxu0 }
 0x34c   :  { %v786_v52 = vmax.f32 %v737_v51, 0.0 }
 0x34e   :  { %v795_v54 = vpack.c.bf16 %v786_v52, %v785_v48 }
 0x350   :  { %2106 = vmatprep.subr.bf16.mxu0 %v795_v54 }
 0x351   :  { %2107 = vmatpush3.bf16.msra.mxu0 %v795_v54 }
 0x352   :  { %2085 = vmatpush3.bf16.xpose.msra.mxu1 %v817_v11  ;;  %2108 = vmatprep.subr.bf16.mxu0 %v796_v53  ;;  %v940_v11 = vpack.c.bf16 %v939_v2, %v938_v0 }
 0x353   :  { %2280 = vmatprep.subr.msk.bf16.mxu1 %vm138_vm0, %v771_v63 }
 0x355   :  { %2109 = vmatpush3.bf16.msra.mxu0 %v796_v53 }
 0x356   :  { %2114 = vmatprep.subr.bf16.mxu0 %v936_v57 }
 0x35a   :  { %2087 = vmatpush3.bf16.xpose.msra.mxu1 %v820_v12  ;;  %v942_v12 = vld [vmem:[#allocation7 + $0x20] sm:$0xff] }
 0x35b   :  { %2281 = vmatprep.subr.msk.bf16.mxu1 %vm138_vm0, %v772_v62 }
 0x362   :  { %2089 = vmatpush3.bf16.xpose.msra.mxu1 %v823_v13 }
 0x363   :  { %2132 = vmatprep.subr.bf16.mxu1 %v940_v11 }
 0x369   :  { %2091 = vmatmul.mubr.msk.bf16.vlgmr.msra.gmra.mrb[36].mxu1 %vm138_vm0, %v2458_v1 }
 0x36a   :  { %2134 = vmatprep.mubr.msk.bf16.mxu1 %vm138_vm0, %v2549_v3  ;;  %2133 = vmatpush3.bf16.msra.mxu1 %v940_v11 }
 0x371   :  { %2135 = vmatmul.mubr.msk.bf16.vlgmr.msra.gmra.mrb[40].mxu1 %vm138_vm0, %v2553_v4 }
 0x372   :  { %2138 = vmatprep.mubr.msk.bf16.mxu1 %vm138_vm0, %v2555_v5 }
 0x379   :  { %2139 = vmatmul.mubr.msk.bf16.gmra.mrb[44].mxu1 %vm138_vm0, %v2563_v6 }
 0x37a   :  { %2142 = vmatprep.mubr.msk.bf16.mxu1 %vm138_vm0, %v2565_v7 }
 0x381   :  { %2143 = vmatmul.mubr.msk.bf16.gmra.mrb[48].mxu1 %vm138_vm0, %v2571_v8 }
 0x382   :  { %2146 = vmatprep.mubr.msk.bf16.mxu1 %vm138_vm0, %v2573_v9 }
 0x389   :  { %2147 = vmatmul.mubr.msk.bf16.gmra.mrb[52].mxu1 %vm138_vm0, %v2579_v10 }
 0x43c   :  { %v2092_v58 = vpop.f32.mrb[36].mxu1 }
 0x43d   :  { %v859_v59 = vpop.f32.mrb[37].mxu1  ;;  %v874_v63 = vpack.c.bf16 %v2092_v58, %v2092_v58 }
 0x43e   :  { %v2093_v60 = vpop.f32.mrb[38].mxu1 }
 0x43f   :  { %v862_v61 = vpop.f32.mrb[39].mxu1 }
 0x440   :  { %v873_v62 = vpack.c.bf16 %v862_v61, %v859_v59 }
 0x442   :  { %2110 = vmatprep.mubr.bf16.mxu0 %v873_v62 }
 0x443   :  { %2111 = vmatmul.mubr.bf16.vlgmr.msra.gmra.mrb[36].mxu0 %v874_v63 }
 0x444   :  { %2115 = vmatpush3.bf16.msra.mxu0 %v936_v57  ;;  %2116 = vmatprep.mubr.msk.bf16.mxu0 %vm138_vm0, %v2549_v3 }
 0x44b   :  { %2117 = vmatmul.mubr.msk.bf16.vlgmr.msra.gmra.mrb[40].mxu0 %vm138_vm0, %v2553_v4  ;;  %v943_v4 = vld [vmem:[#allocation7 + $0x28] sm:$0xff] }
 0x44c   :  { %2120 = vmatprep.mubr.msk.bf16.mxu0 %vm138_vm0, %v2555_v5  ;;  %v1186_v13 = vpack.c.bf16 %v943_v4, %v942_v12 }
 0x453   :  { %2121 = vmatmul.mubr.msk.bf16.gmra.mrb[44].mxu0 %vm138_vm0, %v2563_v6 }
 0x454   :  { %2124 = vmatprep.mubr.msk.bf16.mxu0 %vm138_vm0, %v2565_v7 }
 0x45b   :  { %2125 = vmatmul.mubr.msk.bf16.gmra.mrb[48].mxu0 %vm138_vm0, %v2571_v8 }
 0x45c   :  { %2128 = vmatprep.mubr.msk.bf16.mxu0 %vm138_vm0, %v2573_v9 }
 0x463   :  { %2129 = vmatmul.mubr.msk.bf16.gmra.mrb[52].mxu0 %vm138_vm0, %v2579_v10 }
 0x464   :  { %2166 = vmatprep.mubr.msk.bf16.mxu0 %vm138_vm0, %v1186_v13 }
 0x516   :  { %v2112_v5 = vpop.f32.mrb[36].mxu0 }
 0x517   :  { %2318 = vrcp.f32 %v2112_v5  ;;  %v909_v14 = vpop.f32.mrb[37].mxu0  ;;  %v2136_v5 = vpop.f32.mrb[40].mxu1 }
 0x518   :  { %v2113_v15 = vpop.f32.mrb[38].mxu0 }
 0x519   :  { %v912_v17 = vpop.f32.mrb[39].mxu0  ;;  %v1075_v15 = vpop.f32.mrb[41].mxu1 }
 0x51e   :  { %v2118_v18 = vpop.f32.mrb[40].mxu0 }
 0x51f   :  { %v978_v19 = vpop.f32.mrb[41].mxu0  ;;  %v1140_v22 = vmax.f32 %v2118_v18, 0.0  ;;  %v2137_v18 = vpop.f32.mrb[42].mxu1 }
 0x520   :  { %v2119_v20 = vpop.f32.mrb[42].mxu0  ;;  %v1138_v26 = vmax.f32 %v978_v19, 0.0  ;;  %v1165_v19 = vmax.f32 %v2137_v18, 0.0 }
 0x521   :  { %v2319_v21 = vpop.eup %2318  ;;  %v1141_v23 = vmax.f32 %v2119_v20, 0.0  ;;  %v981_v24 = vpop.f32.mrb[43].mxu0 }
 0x522   :  { %v927_v25 = vrot.slane %v2319_v21, %v2649_v16  ;;  %v1139_v27 = vmax.f32 %v981_v24, 0.0  ;;  %v1078_v20 = vpop.f32.mrb[43].mxu1 }
 0x523   :  { %v1155_v28 = vpack.c.bf16 %v1141_v23, %v1140_v22  ;;  %v1163_v21 = vmax.f32 %v1078_v20, 0.0  ;;  %v2140_v24 = vpop.f32.mrb[44].mxu1 }
 0x524   :  { %v928_v29 = vmul.f32 %v927_v25, %v909_v14  ;;  %v929_v30 = vmul.f32 %v927_v25, %v912_v17  ;;  %v1154_v31 = vpack.c.bf16 %v1139_v27, %v1138_v26  ;;  %v1164_v14 = vmax.f32 %v2136_v5, 0.0  ;;  %v1091_v26 = vpop.f32.mrb[45].mxu1 }
 0x525   :  { %v1194_v43 = vsel %vm138_vm0, %v1155_v28, 0  ;;  %v1162_v17 = vmax.f32 %v1075_v15, 0.0  ;;  %v1168_v25 = vmax.f32 %v2140_v24, 0.0  ;;  %v1166_v27 = vmax.f32 %v1091_v26, 0.0 }
 0x526   :  { %931 = vst.msk [vmem:[#allocation10 + $0x10] sm:$0xff] %vm138_vm0, %v928_v29  ;;  %932 = vst.msk [vmem:[#allocation10 + $0x18] sm:$0xff] %vm138_vm0, %v929_v30  ;;  %2282 = vmatprep.subr.msk.bf16.mxu0 %vm138_vm0, %v1154_v31  ;;  %v1191_v32 = vsel %vm138_vm0, %v1154_v31, 0  ;;  %v2122_v33 = vpop.f32.mrb[44].mxu0  ;;  %v1179_v22 = vpack.c.bf16 %v1165_v19, %v1164_v14 }
 0x527   :  { %2151 = vmatpush3.bf16.xpose.msra.mxu0 %v1191_v32  ;;  %v1144_v34 = vmax.f32 %v2122_v33, 0.0  ;;  %v994_v35 = vpop.f32.mrb[45].mxu0  ;;  %v1178_v23 = vpack.c.bf16 %v1163_v21, %v1162_v17 }
 0x528   :  { %2283 = vmatprep.subr.msk.bf16.mxu0 %vm138_vm0, %v1155_v28  ;;  %v1142_v36 = vmax.f32 %v994_v35, 0.0  ;;  %v2123_v37 = vpop.f32.mrb[46].mxu0  ;;  %v2141_v28 = vpop.f32.mrb[46].mxu1 }
 0x529   :  { %v1145_v38 = vmax.f32 %v2123_v37, 0.0  ;;  %v997_v39 = vpop.f32.mrb[47].mxu0  ;;  %2170 = vmatprep.subr.bf16.mxu1 %v1178_v23  ;;  %v1169_v29 = vmax.f32 %v2141_v28, 0.0 }
 0x52a   :  { %v1143_v40 = vmax.f32 %v997_v39, 0.0  ;;  %2171 = vmatpush3.bf16.msra.mxu1 %v1178_v23 }
 0x52b   :  { %v1157_v41 = vpack.c.bf16 %v1145_v38, %v1144_v34  ;;  %2172 = vmatprep.subr.bf16.mxu1 %v1179_v22  ;;  %v1181_v31 = vpack.c.bf16 %v1169_v29, %v1168_v25 }
 0x52c   :  { %v1156_v42 = vpack.c.bf16 %v1143_v40, %v1142_v36 }
 0x52d   :  { %v1200_v2 = vsel %vm138_vm0, %v1157_v41, 0 }
 0x52e   :  { %v2126_v44 = vpop.f32.mrb[48].mxu0  ;;  %v1197_v54 = vsel %vm138_vm0, %v1156_v42, 0  ;;  %2173 = vmatpush3.bf16.msra.mxu1 %v1179_v22 }
 0x52f   :  { %2153 = vmatpush3.bf16.xpose.msra.mxu0 %v1194_v43  ;;  %v1148_v45 = vmax.f32 %v2126_v44, 0.0  ;;  %v1010_v46 = vpop.f32.mrb[49].mxu0 }
 0x530   :  { %2284 = vmatprep.subr.msk.bf16.mxu0 %vm138_vm0, %v1156_v42  ;;  %v1146_v47 = vmax.f32 %v1010_v46, 0.0  ;;  %v2127_v48 = vpop.f32.mrb[50].mxu0 }
 0x531   :  { %v1149_v49 = vmax.f32 %v2127_v48, 0.0  ;;  %v1013_v50 = vpop.f32.mrb[51].mxu0 }
 0x532   :  { %v1147_v51 = vmax.f32 %v1013_v50, 0.0 }
 0x533   :  { %v1159_v52 = vpack.c.bf16 %v1149_v49, %v1148_v45 }
 0x534   :  { %v1158_v53 = vpack.c.bf16 %v1147_v51, %v1146_v47 }
 0x535   :  { %v1206_v12 = vsel %vm138_vm0, %v1159_v52, 0 }
 0x536   :  { %v2130_v55 = vpop.f32.mrb[52].mxu0  ;;  %v1203_v11 = vsel %vm138_vm0, %v1158_v53, 0 }
 0x537   :  { %2155 = vmatpush3.bf16.xpose.msra.mxu0 %v1197_v54  ;;  %v1152_v56 = vmax.f32 %v2130_v55, 0.0  ;;  %v1026_v57 = vpop.f32.mrb[53].mxu0  ;;  %v1324_v54 = vld [vmem:[#allocation5 + $0x38] sm:$0xff] }
 0x538   :  { %2285 = vmatprep.subr.msk.bf16.mxu0 %vm138_vm0, %v1157_v41  ;;  %v1150_v58 = vmax.f32 %v1026_v57, 0.0  ;;  %v2131_v59 = vpop.f32.mrb[54].mxu0 }
 0x539   :  { %v1153_v60 = vmax.f32 %v2131_v59, 0.0  ;;  %v1029_v61 = vpop.f32.mrb[55].mxu0 }
 0x53a   :  { %v1151_v62 = vmax.f32 %v1029_v61, 0.0 }
 0x53b   :  { %v1161_v63 = vpack.c.bf16 %v1153_v60, %v1152_v56 }
 0x53c   :  { %v1160_v0 = vpack.c.bf16 %v1151_v62, %v1150_v58  ;;  %v2324_v62 = vld [vmem:[#allocation2] sm:$0xff]  }
 0x53d   :  { %v1212_v13 = vsel %vm138_vm0, %v1161_v63, 0 }
 0x53e   :  { %v1209_v4 = vsel %vm138_vm0, %v1160_v0, 0 }
 0x53f   :  { %2157 = vmatpush3.bf16.xpose.msra.mxu0 %v1200_v2  ;;  %v1327_v2 = vld [vmem:[#allocation8 + $0x30] sm:$0xff] }
 0x540   :  { %2286 = vmatprep.subr.msk.bf16.mxu0 %vm138_vm0, %v1158_v53  ;;  %v1323_v53 = vld [vmem:[#allocation5 + $0x30] sm:$0xff] }
 0x541   :  { %v1325_v55 = vpack.c.bf16 %v1324_v54, %v1323_v53 }
 0x547   :  { %2159 = vmatpush3.bf16.xpose.msra.mxu0 %v1203_v11  ;;  %v1328_v11 = vld [vmem:[#allocation8 + $0x38] sm:$0xff] }
 0x548   :  { %2287 = vmatprep.subr.msk.bf16.mxu0 %vm138_vm0, %v1159_v52 }
 0x54f   :  { %2161 = vmatpush3.bf16.xpose.msra.mxu0 %v1206_v12  ;;  %v1329_v12 = vpack.c.bf16 %v1328_v11, %v1327_v2 }
 0x550   :  { %2288 = vmatprep.subr.msk.bf16.mxu0 %vm138_vm0, %v1160_v0  ;;  %v2326_v0 = vld [vmem:[#allocation2 + $0x10] sm:$0xff]  }
 0x557   :  { %2163 = vmatpush3.bf16.xpose.msra.mxu0 %v1209_v4  ;;  %v1331_v4 = vld [vmem:[#allocation7 + $0x30] sm:$0xff] }
 0x558   :  { %2289 = vmatprep.subr.msk.bf16.mxu0 %vm138_vm0, %v1161_v63  ;;  %v2325_v63 = vld [vmem:[#allocation2 + $0x8] sm:$0xff]  }
 0x55f   :  { %2165 = vmatpush3.bf16.xpose.msra.mxu0 %v1212_v13  ;;  %v1332_v13 = vld [vmem:[#allocation7 + $0x38] sm:$0xff] }
 0x560   :  { %2208 = vmatprep.subr.bf16.mxu0 %v1329_v12  ;;  %v1575_v5 = vpack.c.bf16 %v1332_v13, %v1331_v4 }
 0x566   :  { %2167 = vmatmul.mubr.msk.bf16.vlgmr.msra.gmra.mrb[56].mxu0 %vm138_vm0, %v2458_v1 }
 0x567   :  { %2210 = vmatprep.mubr.msk.bf16.mxu0 %vm138_vm0, %v2549_v3  ;;  %v1094_v3 = vpop.f32.mrb[47].mxu1  ;;  %2209 = vmatpush3.bf16.msra.mxu0 %v1329_v12 }
 0x568   :  { %v1167_v30 = vmax.f32 %v1094_v3, 0.0  ;;  %v2144_v33 = vpop.f32.mrb[48].mxu1 }
 0x569   :  { %v1172_v34 = vmax.f32 %v2144_v33, 0.0  ;;  %v1107_v35 = vpop.f32.mrb[49].mxu1 }
 0x56a   :  { %v1180_v32 = vpack.c.bf16 %v1167_v30, %v1166_v27  ;;  %v1170_v36 = vmax.f32 %v1107_v35, 0.0  ;;  %v2145_v37 = vpop.f32.mrb[50].mxu1 }
 0x56b   :  { %v1173_v38 = vmax.f32 %v2145_v37, 0.0  ;;  %v1110_v39 = vpop.f32.mrb[51].mxu1 }
 0x56c   :  { %2174 = vmatprep.subr.bf16.mxu1 %v1180_v32  ;;  %v1171_v40 = vmax.f32 %v1110_v39, 0.0  ;;  %v2148_v43 = vpop.f32.mrb[52].mxu1 }
 0x56d   :  { %2175 = vmatpush3.bf16.msra.mxu1 %v1180_v32  ;;  %v1183_v41 = vpack.c.bf16 %v1173_v38, %v1172_v34  ;;  %v1176_v44 = vmax.f32 %v2148_v43, 0.0  ;;  %v1123_v45 = vpop.f32.mrb[53].mxu1 }
 0x56e   :  { %2176 = vmatprep.subr.bf16.mxu1 %v1181_v31  ;;  %v1182_v42 = vpack.c.bf16 %v1171_v40, %v1170_v36  ;;  %v1174_v46 = vmax.f32 %v1123_v45, 0.0  ;;  %v2149_v47 = vpop.f32.mrb[54].mxu1  ;;  %2211 = vmatmul.mubr.msk.bf16.vlgmr.msra.gmra.mrb[60].mxu0 %vm138_vm0, %v2325_v63 }
 0x56f   :  { %v1177_v48 = vmax.f32 %v2149_v47, 0.0  ;;  %v1126_v49 = vpop.f32.mrb[55].mxu1  ;;  %2214 = vmatprep.mubr.msk.bf16.mxu0 %vm138_vm0, %v2326_v0 }
 0x570   :  { %v1175_v50 = vmax.f32 %v1126_v49, 0.0 }
 0x571   :  { %2177 = vmatpush3.bf16.msra.mxu1 %v1181_v31  ;;  %v1185_v51 = vpack.c.bf16 %v1177_v48, %v1176_v44 }
 0x572   :  { %2178 = vmatprep.subr.bf16.mxu1 %v1182_v42  ;;  %v1184_v52 = vpack.c.bf16 %v1175_v50, %v1174_v46 }
 0x575   :  { %2179 = vmatpush3.bf16.msra.mxu1 %v1182_v42 }
 0x576   :  { %2180 = vmatprep.subr.bf16.mxu1 %v1183_v41 }
 0x579   :  { %2181 = vmatpush3.bf16.msra.mxu1 %v1183_v41 }
 0x57a   :  { %2182 = vmatprep.subr.bf16.mxu1 %v1184_v52 }
 0x57d   :  { %2183 = vmatpush3.bf16.msra.mxu1 %v1184_v52 }
 0x57e   :  { %2184 = vmatprep.subr.bf16.mxu1 %v1185_v51 }
 0x581   :  { %2185 = vmatpush3.bf16.msra.mxu1 %v1185_v51 }
 0x582   :  { %2190 = vmatprep.subr.bf16.mxu1 %v1325_v55 }
 0x639   :  { %v2168_v56 = vpop.f32.mrb[56].mxu0 }
 0x63a   :  { %v1248_v57 = vpop.f32.mrb[57].mxu0  ;;  %v1263_v61 = vpack.c.bf16 %v2168_v56, %v2168_v56 }
 0x63b   :  { %v2169_v58 = vpop.f32.mrb[58].mxu0 }
 0x63c   :  { %v1251_v59 = vpop.f32.mrb[59].mxu0 }
 0x63d   :  { %v1262_v60 = vpack.c.bf16 %v1251_v59, %v1248_v57 }
 0x63f   :  { %2186 = vmatprep.mubr.bf16.mxu1 %v1262_v60 }
 0x640   :  { %2187 = vmatmul.mubr.bf16.vlgmr.msra.gmra.mrb[56].mxu1 %v1263_v61 }
 0x641   :  { %2191 = vmatpush3.bf16.msra.mxu1 %v1325_v55  ;;  %2192 = vmatprep.mubr.msk.bf16.mxu1 %vm138_vm0, %v2324_v62 }
 0x648   :  { %2193 = vmatmul.mubr.msk.bf16.vlgmr.msra.gmra.mrb[60].mxu1 %vm138_vm0, %v2325_v63 }
 0x649   :  { %2196 = vmatprep.mubr.msk.bf16.mxu1 %vm138_vm0, %v2326_v0 }
 0x650   :  { %2197 = vmatmul.mubr.msk.bf16.gmra.mrb[64].mxu1 %vm138_vm0, %v2563_v6  ;;  %v2327_v6 = vld [vmem:[#allocation2 + $0x18] sm:$0xff]  }
 0x651   :  { %2200 = vmatprep.mubr.msk.bf16.mxu1 %vm138_vm0, %v2565_v7  ;;  %2215 = vmatmul.mubr.msk.bf16.gmra.mrb[64].mxu0 %vm138_vm0, %v2327_v6  ;;  %v2328_v7 = vld [vmem:[#allocation2 + $0x20] sm:$0xff]  }
 0x652   :  { %2218 = vmatprep.mubr.msk.bf16.mxu0 %vm138_vm0, %v2328_v7 }
 0x658   :  { %2201 = vmatmul.mubr.msk.bf16.gmra.mrb[68].mxu1 %vm138_vm0, %v2571_v8  ;;  %v2329_v8 = vld [vmem:[#allocation2 + $0x28] sm:$0xff]  }
 0x659   :  { %2204 = vmatprep.mubr.msk.bf16.mxu1 %vm138_vm0, %v2573_v9  ;;  %2219 = vmatmul.mubr.msk.bf16.gmra.mrb[68].mxu0 %vm138_vm0, %v2329_v8  ;;  %v2330_v9 = vld [vmem:[#allocation2 + $0x30] sm:$0xff]   ;;  %v2212_v8 = vpop.f32.mrb[60].mxu0 }
 0x65a   :  { %2222 = vmatprep.mubr.msk.bf16.mxu0 %vm138_vm0, %v2330_v9  ;;  %v1553_v9 = vmax.f32 %v2212_v8, 0.0 }
 0x660   :  { %2205 = vmatmul.mubr.msk.bf16.gmra.mrb[72].mxu1 %vm138_vm0, %v2579_v10  ;;  %v2331_v10 = vld [vmem:[#allocation2 + $0x38] sm:$0xff]  }
 0x661   :  { %2223 = vmatmul.mubr.msk.bf16.gmra.mrb[72].mxu0 %vm138_vm0, %v2331_v10  ;;  %2242 = vmatprep.mubr.msk.bf16.mxu1 %vm138_vm0, %v1575_v5  ;;  %v1464_v10 = vpop.f32.mrb[61].mxu0 }
 0x662   :  { %v1551_v4 = vmax.f32 %v1464_v10, 0.0  ;;  %v2213_v13 = vpop.f32.mrb[62].mxu0 }
 0x663   :  { %v1554_v5 = vmax.f32 %v2213_v13, 0.0 }
 0x713   :  { %v2188_v14 = vpop.f32.mrb[56].mxu1 }
 0x714   :  { %2320 = vrcp.f32 %v2188_v14  ;;  %v1298_v15 = vpop.f32.mrb[57].mxu1  ;;  %v1467_v14 = vpop.f32.mrb[63].mxu0 }
 0x715   :  { %v2189_v17 = vpop.f32.mrb[58].mxu1 }
 0x716   :  { %v1301_v18 = vpop.f32.mrb[59].mxu1  ;;  %v1568_v17 = vpack.c.bf16 %v1554_v5, %v1553_v9 }
 0x71b   :  { %v2194_v19 = vpop.f32.mrb[60].mxu1 }
 0x71c   :  { %v1367_v20 = vpop.f32.mrb[61].mxu1  ;;  %v1529_v23 = vmax.f32 %v2194_v19, 0.0 }
 0x71d   :  { %v2195_v21 = vpop.f32.mrb[62].mxu1  ;;  %v1527_v27 = vmax.f32 %v1367_v20, 0.0 }
 0x71e   :  { %v2321_v22 = vpop.eup %2320  ;;  %v1530_v24 = vmax.f32 %v2195_v21, 0.0  ;;  %v1370_v25 = vpop.f32.mrb[63].mxu1 }
 0x71f   :  { %v1316_v26 = vrot.slane %v2321_v22, %v2649_v16  ;;  %v1528_v28 = vmax.f32 %v1370_v25, 0.0 }
 0x720   :  { %v1544_v29 = vpack.c.bf16 %v1530_v24, %v1529_v23 }
 0x721   :  { %v1317_v3 = vmul.f32 %v1316_v26, %v1298_v15  ;;  %v1318_v30 = vmul.f32 %v1316_v26, %v1301_v18  ;;  %v1543_v31 = vpack.c.bf16 %v1528_v28, %v1527_v27  ;;  %v1552_v15 = vmax.f32 %v1467_v14, 0.0 }
 0x722   :  { %v1583_v43 = vsel %vm138_vm0, %v1544_v29, 0 }
 0x723   :  { %1320 = vst.msk [vmem:[#allocation10 + $0x20] sm:$0xff] %vm138_vm0, %v1317_v3  ;;  %1321 = vst.msk [vmem:[#allocation10 + $0x28] sm:$0xff] %vm138_vm0, %v1318_v30  ;;  %2290 = vmatprep.subr.msk.bf16.mxu1 %vm138_vm0, %v1543_v31  ;;  %v1580_v32 = vsel %vm138_vm0, %v1543_v31, 0  ;;  %v2198_v33 = vpop.f32.mrb[64].mxu1  ;;  %v1567_v18 = vpack.c.bf16 %v1552_v15, %v1551_v4 }
 0x724   :  { %2227 = vmatpush3.bf16.xpose.msra.mxu1 %v1580_v32  ;;  %v1533_v34 = vmax.f32 %v2198_v33, 0.0  ;;  %v1383_v35 = vpop.f32.mrb[65].mxu1  ;;  %v2216_v19 = vpop.f32.mrb[64].mxu0 }
 0x725   :  { %2291 = vmatprep.subr.msk.bf16.mxu1 %vm138_vm0, %v1544_v29  ;;  %v1531_v36 = vmax.f32 %v1383_v35, 0.0  ;;  %v2199_v37 = vpop.f32.mrb[66].mxu1  ;;  %2246 = vmatprep.subr.bf16.mxu0 %v1567_v18  ;;  %v1557_v20 = vmax.f32 %v2216_v19, 0.0  ;;  %v1480_v21 = vpop.f32.mrb[65].mxu0 }
 0x726   :  { %v1534_v38 = vmax.f32 %v2199_v37, 0.0  ;;  %v1386_v39 = vpop.f32.mrb[67].mxu1  ;;  %2247 = vmatpush3.bf16.msra.mxu0 %v1567_v18  ;;  %v1555_v22 = vmax.f32 %v1480_v21, 0.0  ;;  %v2217_v23 = vpop.f32.mrb[66].mxu0 }
 0x727   :  { %v1532_v40 = vmax.f32 %v1386_v39, 0.0  ;;  %2248 = vmatprep.subr.bf16.mxu0 %v1568_v17  ;;  %v1558_v24 = vmax.f32 %v2217_v23, 0.0 }
 0x728   :  { %v1546_v41 = vpack.c.bf16 %v1534_v38, %v1533_v34 }
 0x729   :  { %v1545_v42 = vpack.c.bf16 %v1532_v40, %v1531_v36  ;;  %v1570_v26 = vpack.c.bf16 %v1558_v24, %v1557_v20 }
 0x72a   :  { %v1589_v2 = vsel %vm138_vm0, %v1546_v41, 0  ;;  %2249 = vmatpush3.bf16.msra.mxu0 %v1568_v17 }
 0x72b   :  { %v2202_v44 = vpop.f32.mrb[68].mxu1  ;;  %v1586_v54 = vsel %vm138_vm0, %v1545_v42, 0 }
 0x72c   :  { %2229 = vmatpush3.bf16.xpose.msra.mxu1 %v1583_v43  ;;  %v1537_v45 = vmax.f32 %v2202_v44, 0.0  ;;  %v1399_v46 = vpop.f32.mrb[69].mxu1 }
 0x72d   :  { %2292 = vmatprep.subr.msk.bf16.mxu1 %vm138_vm0, %v1545_v42  ;;  %v1535_v47 = vmax.f32 %v1399_v46, 0.0  ;;  %v2203_v48 = vpop.f32.mrb[70].mxu1 }
 0x72e   :  { %v1538_v49 = vmax.f32 %v2203_v48, 0.0  ;;  %v1402_v50 = vpop.f32.mrb[71].mxu1 }
 0x72f   :  { %v1536_v51 = vmax.f32 %v1402_v50, 0.0 }
 0x730   :  { %v1548_v52 = vpack.c.bf16 %v1538_v49, %v1537_v45 }
 0x731   :  { %v1547_v53 = vpack.c.bf16 %v1536_v51, %v1535_v47 }
 0x732   :  { %v1595_v12 = vsel %vm138_vm0, %v1548_v52, 0 }
 0x733   :  { %v2206_v55 = vpop.f32.mrb[72].mxu1  ;;  %v1592_v11 = vsel %vm138_vm0, %v1547_v53, 0 }
 0x734   :  { %2231 = vmatpush3.bf16.xpose.msra.mxu1 %v1586_v54  ;;  %v1541_v56 = vmax.f32 %v2206_v55, 0.0  ;;  %v1415_v57 = vpop.f32.mrb[73].mxu1 }
 0x735   :  { %2293 = vmatprep.subr.msk.bf16.mxu1 %vm138_vm0, %v1546_v41  ;;  %v1539_v58 = vmax.f32 %v1415_v57, 0.0  ;;  %v2207_v59 = vpop.f32.mrb[74].mxu1 }
 0x736   :  { %v1542_v60 = vmax.f32 %v2207_v59, 0.0  ;;  %v1418_v61 = vpop.f32.mrb[75].mxu1 }
 0x737   :  { %v1540_v62 = vmax.f32 %v1418_v61, 0.0 }
 0x738   :  { %v1550_v63 = vpack.c.bf16 %v1542_v60, %v1541_v56 }
 0x739   :  { %v1549_v0 = vpack.c.bf16 %v1540_v62, %v1539_v58 }
 0x73a   :  { %v1601_v7 = vsel %vm138_vm0, %v1550_v63, 0 }
 0x73b   :  { %v1598_v6 = vsel %vm138_vm0, %v1549_v0, 0 }
 0x73c   :  { %2233 = vmatpush3.bf16.xpose.msra.mxu1 %v1589_v2 }
 0x73d   :  { %2294 = vmatprep.subr.msk.bf16.mxu1 %vm138_vm0, %v1547_v53 }
 0x744   :  { %2235 = vmatpush3.bf16.xpose.msra.mxu1 %v1592_v11 }
 0x745   :  { %2295 = vmatprep.subr.msk.bf16.mxu1 %vm138_vm0, %v1548_v52 }
 0x74c   :  { %2237 = vmatpush3.bf16.xpose.msra.mxu1 %v1595_v12 }
 0x74d   :  { %2296 = vmatprep.subr.msk.bf16.mxu1 %vm138_vm0, %v1549_v0 }
 0x754   :  { %2239 = vmatpush3.bf16.xpose.msra.mxu1 %v1598_v6 }
 0x755   :  { %2297 = vmatprep.subr.msk.bf16.mxu1 %vm138_vm0, %v1550_v63 }
 0x75c   :  { %2241 = vmatpush3.bf16.xpose.msra.mxu1 %v1601_v7 }
 0x763   :  { %2243 = vmatmul.mubr.msk.bf16.vlgmr.msra.gmra.mrb[76].mxu1 %vm138_vm0, %v2458_v1  ;;  %v1483_v1 = vpop.f32.mrb[67].mxu0 }
 0x764   :  { %v1556_v25 = vmax.f32 %v1483_v1, 0.0  ;;  %v2220_v28 = vpop.f32.mrb[68].mxu0 }
 0x765   :  { %v1561_v29 = vmax.f32 %v2220_v28, 0.0  ;;  %v1496_v3 = vpop.f32.mrb[69].mxu0 }
 0x766   :  { %v1569_v27 = vpack.c.bf16 %v1556_v25, %v1555_v22  ;;  %v1559_v30 = vmax.f32 %v1496_v3, 0.0  ;;  %v2221_v31 = vpop.f32.mrb[70].mxu0 }
 0x767   :  { %v1562_v32 = vmax.f32 %v2221_v31, 0.0  ;;  %v1499_v33 = vpop.f32.mrb[71].mxu0 }
 0x768   :  { %2250 = vmatprep.subr.bf16.mxu0 %v1569_v27  ;;  %v1560_v34 = vmax.f32 %v1499_v33, 0.0  ;;  %v2224_v37 = vpop.f32.mrb[72].mxu0 }
 0x769   :  { %2251 = vmatpush3.bf16.msra.mxu0 %v1569_v27  ;;  %v1572_v35 = vpack.c.bf16 %v1562_v32, %v1561_v29  ;;  %v1565_v38 = vmax.f32 %v2224_v37, 0.0  ;;  %v1512_v39 = vpop.f32.mrb[73].mxu0 }
 0x76a   :  { %2252 = vmatprep.subr.bf16.mxu0 %v1570_v26  ;;  %v1571_v36 = vpack.c.bf16 %v1560_v34, %v1559_v30  ;;  %v1563_v40 = vmax.f32 %v1512_v39, 0.0  ;;  %v2225_v41 = vpop.f32.mrb[74].mxu0 }
 0x76b   :  { %v1566_v42 = vmax.f32 %v2225_v41, 0.0  ;;  %v1515_v43 = vpop.f32.mrb[75].mxu0 }
 0x76c   :  { %v1564_v44 = vmax.f32 %v1515_v43, 0.0 }
 0x76d   :  { %2253 = vmatpush3.bf16.msra.mxu0 %v1570_v26  ;;  %v1574_v45 = vpack.c.bf16 %v1566_v42, %v1565_v38 }
 0x76e   :  { %2254 = vmatprep.subr.bf16.mxu0 %v1571_v36  ;;  %v1573_v46 = vpack.c.bf16 %v1564_v44, %v1563_v40 }
 0x771   :  { %2255 = vmatpush3.bf16.msra.mxu0 %v1571_v36 }
 0x772   :  { %2256 = vmatprep.subr.bf16.mxu0 %v1572_v35 }
 0x775   :  { %2257 = vmatpush3.bf16.msra.mxu0 %v1572_v35 }
 0x776   :  { %2258 = vmatprep.subr.bf16.mxu0 %v1573_v46 }
 0x779   :  { %2259 = vmatpush3.bf16.msra.mxu0 %v1573_v46 }
 0x77a   :  { %2260 = vmatprep.subr.bf16.mxu0 %v1574_v45 }
 0x77d   :  { %2261 = vmatpush3.bf16.msra.mxu0 %v1574_v45 }
 0x836   :  { %v2244_v47 = vpop.f32.mrb[76].mxu1 }
 0x837   :  { %v1637_v48 = vpop.f32.mrb[77].mxu1  ;;  %v1652_v52 = vpack.c.bf16 %v2244_v47, %v2244_v47 }
 0x838   :  { %v2245_v49 = vpop.f32.mrb[78].mxu1 }
 0x839   :  { %v1640_v50 = vpop.f32.mrb[79].mxu1 }
 0x83a   :  { %v1651_v51 = vpack.c.bf16 %v1640_v50, %v1637_v48 }
 0x83c   :  { %2262 = vmatprep.mubr.bf16.mxu0 %v1651_v51 }
 0x83d   :  { %2263 = vmatmul.mubr.bf16.vlgmr.msra.gmra.mrb[76].mxu0 %v1652_v52 }
 0x910   :  { %v2264_v53 = vpop.f32.mrb[76].mxu0 }
 0x911   :  { %2322 = vrcp.f32 %v2264_v53  ;;  %v1687_v54 = vpop.f32.mrb[77].mxu0 }
 0x912   :  { %v2265_v55 = vpop.f32.mrb[78].mxu0 }
 0x913   :  { %v1690_v56 = vpop.f32.mrb[79].mxu0 }
 0x91b   :  { %v2323_v57 = vpop.eup %2322 }
 0x91c   :  { %v1705_v58 = vrot.slane %v2323_v57, %v2649_v16 }
 0x91e   :  { %v1706_v59 = vmul.f32 %v1705_v58, %v1687_v54  ;;  %v1707_v60 = vmul.f32 %v1705_v58, %v1690_v56 }
 0x920   :  { %1709 = vst.msk [vmem:[#allocation10 + $0x30] sm:$0xff] %vm138_vm0, %v1706_v59  ;;  %1710 = vst.msk [vmem:[#allocation10 + $0x38] sm:$0xff] %vm138_vm0, %v1707_v60 }
 0x921   :  { %2431 = shalt.err (!%p2428_p8)
}
 0x922   :  { %s2432_s17 = scalar_lea.hbm %s2792_s4, 1024 }
 0x923   :  { %p2433_p9 = scmp.ne.s32.totalorder %s2792_s4, %s2432_s17  ;;  %p2436_p10 = scmp.lt.u32.totalorder %s2432_s17, %s2792_s4 }
 0x925   :  { %p2438_p11 = pnand %p2436_p10, %p2433_p9 }
 0x927   :  { %2441 = shalt.err (!%p2438_p11)
}
 0x928   :  { %1722 = dma.vmem_to_hbm [thread:$0]  %s1717_s13, 1024, %s2792_s4, [#allocation4], %s2451_s25, %s2451_s25, %s2452_s26  }
 0x929   :  { %2448 = dma.done.wait [#allocation4], 1024  }
 0x92a   :  { %2449 = vsyncadd [#allocation4], 4294966272 }
 0x92b   :  { %1726 = vsyncpa [#allocation3], 1 }
 0x92c   :  { %1727 = vsyncpa [#allocation6], 1 }
 0x92d   :  { %1728 = vsyncpa [#allocation9], 1 }
 0x92e   :  { %1729 = vsyncpa [#allocation4], 1 }

</bundles_post_ra>
